<compile_context>
chip_gen: v5e
topology: v5e:2x2
jax: 0.10.0
libtpu: 0.0.40
codegen_flags: <defaults>
</compile_context>

<pallas_src>
import math
from functools import partial

import jax
import jax.numpy as jnp
from jax import lax
from jax.experimental import pallas as pl
from jax.experimental.pallas import tpu as pltpu


def _pair(v):
    if isinstance(v, int):
        return v, v
    v = tuple(v)
    if len(v) == 1:
        return int(v[0]), int(v[0])
    return int(v[0]), int(v[1])


def _pick_row_tile(HO, itemsize):
    """Output-row tile: must be a multiple of the sublane tile or the full dim."""
    sub = max(8, 32 // max(int(itemsize), 1))       # 8 for f32, 16 bf16, 32 int8
    if HO <= 4 * sub:
        return HO                                    # full dim -> always legal
    for th in (4 * sub, 2 * sub, sub):
        if HO % th == 0:
            return th
    return HO                                        # fallback: full dim


def _pick_batch_tile(NC, H, W, TH, WO, itemsize, budget=12 << 20):
    """Largest divisor of N*C whose double-buffered blocks fit the VMEM budget."""
    per = 2 * (H * W + TH * WO) * itemsize
    best = 1
    for tb in range(1, NC + 1):
        if NC % tb == 0 and tb * per <= budget:
            best = tb
    return best


def _maxpool_kernel(x_ref, o_ref, *, KH, KW, SH, SW, top, left, right,
                    H, W, WO, TH, static_rows):
    """Compute TH output rows of the zero-padded max pool.

    x_ref: (TB, H, W)   whole (unpadded) image per (batch, channel) slice;
                        resident across the output-row-block grid axis.
    o_ref: (TB, TH, WO) TH output rows.
    """
    TB = x_ref.shape[0]
    dtype = x_ref.dtype
    WD = (WO - 1) * SW + 1            # dense (stride-1) width before subsample

    sel = None
    if SW > 1:
        # One-hot selection matrix: out[:, wo] = dense[:, wo * SW].
        # Gather-free subsample on the MXU; exact because every contribution is
        # value * 1.0 or value * 0.0 (HIGHEST precision keeps f32 exact).
        sel = (lax.broadcasted_iota(jnp.int32, (WD, WO), 0)
               == SW * lax.broadcasted_iota(jnp.int32, (WD, WO), 1)
               ).astype(jnp.float32)

    row0 = 0 if static_rows else pl.program_id(1) * TH
    zero_row = jnp.zeros((TB, W), dtype)             # hoisted (no CSE in-loop)

    for r in range(TH):                              # static, small (<= 32)
        ho = row0 + r
        # ---- vertical taps: rows outside [0, H) are the F.pad zeros ----------
        row_max = None
        for kh in range(KH):                         # static, tiny (e.g. 3)
            h = ho * SH - top + kh
            if static_rows:                          # h is a Python int
                row = x_ref[:, h, :] if 0 <= h < H else zero_row
            else:                                    # h is traced (row block > 1)
                hc = jnp.clip(h, 0, H - 1)
                row = x_ref[:, hc, :]                # (TB, W) contiguous
                row = jnp.where(jnp.logical_and(h >= 0, h < H), row, zero_row)
            row_max = row if row_max is None else jnp.maximum(row_max, row)
        # ---- build the zero-padded row (exactly what F.pad would produce) ----
        pieces = []
        if left > 0:
            pieces.append(jnp.zeros((TB, left), dtype))
        pieces.append(row_max)
        if right > 0:
            pieces.append(jnp.zeros((TB, right), dtype))
        padded = jnp.concatenate(pieces, axis=1) if len(pieces) > 1 else row_max
        # ---- horizontal taps at stride 1: static lane slices only -------------
        dense = padded[:, 0:WD]
        for kw in range(1, KW):
            dense = jnp.maximum(dense, padded[:, kw:kw + WD])
        # ---- subsample every SW-th column --------------------------------------
        if SW == 1:
            out_row = dense
        else:
            out_row = jnp.dot(dense.astype(jnp.float32), sel,
                              precision=lax.Precision.HIGHEST,
                              preferred_element_type=jnp.float32)
        o_ref[:, r, :] = out_row.astype(o_ref.dtype)


def maxpool2d_static_same_padding(x, kernel_size, stride=None):
    """x: (N, C, H, W) -> (N, C, ceil(H/sh), ceil(W/sw)).

    Same forward semantics as the PyTorch MaxPool2dStaticSamePadding module
    (static zero "same" padding followed by MaxPool2d(kernel, stride))."""
    if stride is None:
        stride = kernel_size
    KH, KW = _pair(kernel_size)
    SH, SW = _pair(stride)
    N, C, H, W = x.shape
    assert jnp.issubdtype(x.dtype, jnp.floating), "float feature maps only"

    HO = math.ceil(H / SH)
    WO = math.ceil(W / SW)
    extra_v = (HO - 1) * SH - H + KH
    extra_h = (WO - 1) * SW - W + KW
    # TODO(synk): negative "extra" (kernel < stride) would require cropping like
    # F.pad with negative pads; never occurs for BiFPN's (3, 2) config.
    assert extra_v >= 0 and extra_h >= 0
    top, left = extra_v // 2, extra_h // 2
    right = extra_h - left

    NC = N * C
    x3 = x.reshape(NC, H, W)                 # free reshape, keeps NCHW layout

    itemsize = x.dtype.itemsize
    TH = _pick_row_tile(HO, itemsize)
    HB = HO // TH
    TB = _pick_batch_tile(NC, H, W, TH, WO, itemsize)
    NB = NC // TB
    static_rows = (HB == 1)                  # all row indices fold to Python ints

    kernel = partial(_maxpool_kernel, KH=KH, KW=KW, SH=SH, SW=SW,
                     top=top, left=left, right=right,
                     H=H, W=W, WO=WO, TH=TH, static_rows=static_rows)

    # Double-buffered input + output blocks, plus headroom for intermediates.
    vmem_need = 2 * TB * (H * W + TH * WO) * itemsize
    vmem_limit = int(min(64 << 20, max(vmem_need + (8 << 20), 16 << 20)))

    out3 = pl.pallas_call(
        kernel,
        out_shape=jax.ShapeDtypeStruct((NC, HO, WO), x.dtype),
        grid=(NB, HB),
        in_specs=[pl.BlockSpec((TB, H, W), lambda b, hb: (b, 0, 0))],
        out_specs=pl.BlockSpec((TB, TH, WO), lambda b, hb: (b, hb, 0)),
        compiler_params=pltpu.CompilerParams(
            dimension_semantics=("parallel", "arbitrary"),
            vmem_limit_bytes=vmem_limit),
    )(x3)

    return out3.reshape(N, C, HO, WO)


def _reference(x, kernel_size, stride=None):
    """Pure-JAX reference replicating the PyTorch module exactly (NCHW)."""
    if stride is None:
        stride = kernel_size
    KH, KW = _pair(kernel_size)
    SH, SW = _pair(stride)
    N, C, H, W = x.shape
    HO = math.ceil(H / SH)
    WO = math.ceil(W / SW)
    extra_v = (HO - 1) * SH - H + KH
    extra_h = (WO - 1) * SW - W + KW
    top, left = extra_v // 2, extra_h // 2
    bottom, right = extra_v - top, extra_h - left
    xp = jnp.pad(x, ((0, 0), (0, 0), (top, bottom), (left, right)))  # zeros, like F.pad
    return lax.reduce_window(xp, -jnp.inf, lax.max,
                             (1, 1, KH, KW), (1, 1, SH, SW), "VALID")


if __name__ == "__main__":
    key = jax.random.PRNGKey(0)

    # BiFPN-style downsample: kernel 3, stride 2, small NCHW feature map.
    x = jax.random.normal(key, (2, 4, 16, 16), dtype=jnp.float32)
    y = jax.block_until_ready(maxpool2d_static_same_padding(x, 3, 2))
    y_ref = _reference(x, 3, 2)
    assert y.shape == y_ref.shape == (2, 4, 8, 8), (y.shape, y_ref.shape)
    assert jnp.allclose(y, y_ref, atol=1e-6, rtol=1e-6), "mismatch vs reference"

    # Odd spatial sizes (exercises top/left/right zero-padding paths).
    x2 = jax.random.normal(jax.random.PRNGKey(0), (1, 3, 15, 13), dtype=jnp.float32)
    y2 = jax.block_until_ready(maxpool2d_static_same_padding(x2, 3, 2))
    y2_ref = _reference(x2, 3, 2)
    assert y2.shape == y2_ref.shape == (1, 3, 8, 7), (y2.shape, y2_ref.shape)
    assert jnp.allclose(y2, y2_ref, atol=1e-6, rtol=1e-6), "mismatch (odd sizes)"

    # Stride-1 config (exercises the SW == 1 path and symmetric padding).
    x3 = jax.random.normal(jax.random.PRNGKey(0), (1, 4, 16, 16), dtype=jnp.float32)
    y3 = jax.block_until_ready(maxpool2d_static_same_padding(x3, 3, 1))
    y3_ref = _reference(x3, 3, 1)
    assert y3.shape == y3_ref.shape == (1, 4, 16, 16), (y3.shape, y3_ref.shape)
    assert jnp.allclose(y3, y3_ref, atol=1e-6, rtol=1e-6), "mismatch (stride 1)"

    print("KERNEL_OK")
</pallas_src>

<mosaic_0001>
module attributes {stable_mosaic.version = 11 : i64} {
  func.func @_maxpool_kernel(%arg0: i32, %arg1: i32, %arg2: memref<8x16x16xf32, #tpu.memory_space<vmem>>, %arg3: memref<8x8x8xf32, #tpu.memory_space<vmem>>) attributes {dimension_semantics = [#tpu.dimension_semantics<parallel>, #tpu.dimension_semantics<arbitrary>], iteration_bounds = array<i64: 1, 1>, scalar_prefetch = 0 : i64, scratch_operands = 0 : i64, tpu.core_type = #tpu.core_type<tc>, window_params = [{transform_indices = @transform_0, window_bounds = array<i64: 8, 16, 16>}, {transform_indices = @transform_1, window_bounds = array<i64: 8, 8, 8>}]} {
    %0 = tpu.iota {dimensions = array<i32: 0>} : vector<15x8xi32>
    %1 = tpu.iota {dimensions = array<i32: 1>} : vector<15x8xi32>
    %c2_i32 = arith.constant 2 : i32
    %2 = vector.broadcast %c2_i32 : i32 to vector<15x8xi32>
    %3 = arith.muli %2, %1 : vector<15x8xi32>
    %4 = arith.cmpi eq, %0, %3 : vector<15x8xi32>
    %5 = arith.extui %4 : vector<15x8xi1> to vector<15x8xi32>
    %6 = arith.sitofp %5 : vector<15x8xi32> to vector<15x8xf32>
    %cst = arith.constant 0.000000e+00 : f32
    %7 = vector.broadcast %cst : f32 to vector<8x16xf32>
    %c0 = arith.constant 0 : index
    %c0_0 = arith.constant 0 : index
    %c0_1 = arith.constant 0 : index
    %8 = vector.load %arg2[%c0, %c0_0, %c0_1] : memref<8x16x16xf32, #tpu.memory_space<vmem>>, vector<8x1x16xf32>
    %9 = vector.shape_cast %8 : vector<8x1x16xf32> to vector<8x16xf32>
    %c0_2 = arith.constant 0 : index
    %c1 = arith.constant 1 : index
    %c0_3 = arith.constant 0 : index
    %10 = vector.load %arg2[%c0_2, %c1, %c0_3] : memref<8x16x16xf32, #tpu.memory_space<vmem>>, vector<8x1x16xf32>
    %11 = vector.shape_cast %10 : vector<8x1x16xf32> to vector<8x16xf32>
    %12 = arith.maximumf %9, %11 : vector<8x16xf32>
    %c0_4 = arith.constant 0 : index
    %c2 = arith.constant 2 : index
    %c0_5 = arith.constant 0 : index
    %13 = vector.load %arg2[%c0_4, %c2, %c0_5] : memref<8x16x16xf32, #tpu.memory_space<vmem>>, vector<8x1x16xf32>
    %14 = vector.shape_cast %13 : vector<8x1x16xf32> to vector<8x16xf32>
    %15 = arith.maximumf %12, %14 : vector<8x16xf32>
    %cst_6 = arith.constant 0.000000e+00 : f32
    %16 = vector.broadcast %cst_6 : f32 to vector<8x1xf32>
    %17 = tpu.concatenate %15, %16 in 1 : vector<8x16xf32>, vector<8x1xf32> -> vector<8x17xf32>
    %18 = vector.extract_strided_slice %17 {offsets = [0, 0], sizes = [8, 15], strides = [1, 1]} : vector<8x17xf32> to vector<8x15xf32>
    %19 = vector.extract_strided_slice %17 {offsets = [0, 1], sizes = [8, 15], strides = [1, 1]} : vector<8x17xf32> to vector<8x15xf32>
    %20 = arith.maximumf %18, %19 : vector<8x15xf32>
    %21 = vector.extract_strided_slice %17 {offsets = [0, 2], sizes = [8, 15], strides = [1, 1]} : vector<8x17xf32> to vector<8x15xf32>
    %22 = arith.maximumf %20, %21 : vector<8x15xf32>
    %cst_7 = arith.constant dense<0.000000e+00> : vector<8x8xf32>
    %23 = tpu.matmul %22, %6, %cst_7 {dimension_numbers = #tpu.dot_dimension_numbers<[1], [0], [0], [1], [0, 0, 1, 1], [], []>, precision = #tpu.contract_precision<fp32>} : vector<8x15xf32>, vector<15x8xf32>, vector<8x8xf32> -> vector<8x8xf32>
    %c0_8 = arith.constant 0 : index
    %c0_9 = arith.constant 0 : index
    %c0_10 = arith.constant 0 : index
    %24 = vector.load %arg3[%c0_8, %c0_9, %c0_10] : memref<8x8x8xf32, #tpu.memory_space<vmem>>, vector<8x1x8xf32>
    %25 = vector.shape_cast %24 : vector<8x1x8xf32> to vector<8x8xf32>
    %26 = vector.shape_cast %23 : vector<8x8xf32> to vector<8x1x8xf32>
    tpu.vector_store %arg3[%c0_8, %c0_9, %c0_10], %26 {strides = array<i32>} : memref<8x8x8xf32, #tpu.memory_space<vmem>>, vector<8x1x8xf32>,
    %c0_11 = arith.constant 0 : index
    %c2_12 = arith.constant 2 : index
    %c0_13 = arith.constant 0 : index
    %27 = vector.load %arg2[%c0_11, %c2_12, %c0_13] : memref<8x16x16xf32, #tpu.memory_space<vmem>>, vector<8x1x16xf32>
    %28 = vector.shape_cast %27 : vector<8x1x16xf32> to vector<8x16xf32>
    %c0_14 = arith.constant 0 : index
    %c3 = arith.constant 3 : index
    %c0_15 = arith.constant 0 : index
    %29 = vector.load %arg2[%c0_14, %c3, %c0_15] : memref<8x16x16xf32, #tpu.memory_space<vmem>>, vector<8x1x16xf32>
    %30 = vector.shape_cast %29 : vector<8x1x16xf32> to vector<8x16xf32>
    %31 = arith.maximumf %28, %30 : vector<8x16xf32>
    %c0_16 = arith.constant 0 : index
    %c4 = arith.constant 4 : index
    %c0_17 = arith.constant 0 : index
    %32 = vector.load %arg2[%c0_16, %c4, %c0_17] : memref<8x16x16xf32, #tpu.memory_space<vmem>>, vector<8x1x16xf32>
    %33 = vector.shape_cast %32 : vector<8x1x16xf32> to vector<8x16xf32>
    %34 = arith.maximumf %31, %33 : vector<8x16xf32>
    %cst_18 = arith.constant 0.000000e+00 : f32
    %35 = vector.broadcast %cst_18 : f32 to vector<8x1xf32>
    %36 = tpu.concatenate %34, %35 in 1 : vector<8x16xf32>, vector<8x1xf32> -> vector<8x17xf32>
    %37 = vector.extract_strided_slice %36 {offsets = [0, 0], sizes = [8, 15], strides = [1, 1]} : vector<8x17xf32> to vector<8x15xf32>
    %38 = vector.extract_strided_slice %36 {offsets = [0, 1], sizes = [8, 15], strides = [1, 1]} : vector<8x17xf32> to vector<8x15xf32>
    %39 = arith.maximumf %37, %38 : vector<8x15xf32>
    %40 = vector.extract_strided_slice %36 {offsets = [0, 2], sizes = [8, 15], strides = [1, 1]} : vector<8x17xf32> to vector<8x15xf32>
    %41 = arith.maximumf %39, %40 : vector<8x15xf32>
    %cst_19 = arith.constant dense<0.000000e+00> : vector<8x8xf32>
    %42 = tpu.matmul %41, %6, %cst_19 {dimension_numbers = #tpu.dot_dimension_numbers<[1], [0], [0], [1], [0, 0, 1, 1], [], []>, precision = #tpu.contract_precision<fp32>} : vector<8x15xf32>, vector<15x8xf32>, vector<8x8xf32> -> vector<8x8xf32>
    %c0_20 = arith.constant 0 : index
    %c1_21 = arith.constant 1 : index
    %c0_22 = arith.constant 0 : index
    %43 = vector.load %arg3[%c0_20, %c1_21, %c0_22] : memref<8x8x8xf32, #tpu.memory_space<vmem>>, vector<8x1x8xf32>
    %44 = vector.shape_cast %43 : vector<8x1x8xf32> to vector<8x8xf32>
    %45 = vector.shape_cast %42 : vector<8x8xf32> to vector<8x1x8xf32>
    tpu.vector_store %arg3[%c0_20, %c1_21, %c0_22], %45 {strides = array<i32>} : memref<8x8x8xf32, #tpu.memory_space<vmem>>, vector<8x1x8xf32>,
    %c0_23 = arith.constant 0 : index
    %c4_24 = arith.constant 4 : index
    %c0_25 = arith.constant 0 : index
    %46 = vector.load %arg2[%c0_23, %c4_24, %c0_25] : memref<8x16x16xf32, #tpu.memory_space<vmem>>, vector<8x1x16xf32>
    %47 = vector.shape_cast %46 : vector<8x1x16xf32> to vector<8x16xf32>
    %c0_26 = arith.constant 0 : index
    %c5 = arith.constant 5 : index
    %c0_27 = arith.constant 0 : index
    %48 = vector.load %arg2[%c0_26, %c5, %c0_27] : memref<8x16x16xf32, #tpu.memory_space<vmem>>, vector<8x1x16xf32>
    %49 = vector.shape_cast %48 : vector<8x1x16xf32> to vector<8x16xf32>
    %50 = arith.maximumf %47, %49 : vector<8x16xf32>
    %c0_28 = arith.constant 0 : index
    %c6 = arith.constant 6 : index
    %c0_29 = arith.constant 0 : index
    %51 = vector.load %arg2[%c0_28, %c6, %c0_29] : memref<8x16x16xf32, #tpu.memory_space<vmem>>, vector<8x1x16xf32>
    %52 = vector.shape_cast %51 : vector<8x1x16xf32> to vector<8x16xf32>
    %53 = arith.maximumf %50, %52 : vector<8x16xf32>
    %cst_30 = arith.constant 0.000000e+00 : f32
    %54 = vector.broadcast %cst_30 : f32 to vector<8x1xf32>
    %55 = tpu.concatenate %53, %54 in 1 : vector<8x16xf32>, vector<8x1xf32> -> vector<8x17xf32>
    %56 = vector.extract_strided_slice %55 {offsets = [0, 0], sizes = [8, 15], strides = [1, 1]} : vector<8x17xf32> to vector<8x15xf32>
    %57 = vector.extract_strided_slice %55 {offsets = [0, 1], sizes = [8, 15], strides = [1, 1]} : vector<8x17xf32> to vector<8x15xf32>
    %58 = arith.maximumf %56, %57 : vector<8x15xf32>
    %59 = vector.extract_strided_slice %55 {offsets = [0, 2], sizes = [8, 15], strides = [1, 1]} : vector<8x17xf32> to vector<8x15xf32>
    %60 = arith.maximumf %58, %59 : vector<8x15xf32>
    %cst_31 = arith.constant dense<0.000000e+00> : vector<8x8xf32>
    %61 = tpu.matmul %60, %6, %cst_31 {dimension_numbers = #tpu.dot_dimension_numbers<[1], [0], [0], [1], [0, 0, 1, 1], [], []>, precision = #tpu.contract_precision<fp32>} : vector<8x15xf32>, vector<15x8xf32>, vector<8x8xf32> -> vector<8x8xf32>
    %c0_32 = arith.constant 0 : index
    %c2_33 = arith.constant 2 : index
    %c0_34 = arith.constant 0 : index
    %62 = vector.load %arg3[%c0_32, %c2_33, %c0_34] : memref<8x8x8xf32, #tpu.memory_space<vmem>>, vector<8x1x8xf32>
    %63 = vector.shape_cast %62 : vector<8x1x8xf32> to vector<8x8xf32>
    %64 = vector.shape_cast %61 : vector<8x8xf32> to vector<8x1x8xf32>
    tpu.vector_store %arg3[%c0_32, %c2_33, %c0_34], %64 {strides = array<i32>} : memref<8x8x8xf32, #tpu.memory_space<vmem>>, vector<8x1x8xf32>,
    %c0_35 = arith.constant 0 : index
    %c6_36 = arith.constant 6 : index
    %c0_37 = arith.constant 0 : index
    %65 = vector.load %arg2[%c0_35, %c6_36, %c0_37] : memref<8x16x16xf32, #tpu.memory_space<vmem>>, vector<8x1x16xf32>
    %66 = vector.shape_cast %65 : vector<8x1x16xf32> to vector<8x16xf32>
    %c0_38 = arith.constant 0 : index
    %c7 = arith.constant 7 : index
    %c0_39 = arith.constant 0 : index
    %67 = vector.load %arg2[%c0_38, %c7, %c0_39] : memref<8x16x16xf32, #tpu.memory_space<vmem>>, vector<8x1x16xf32>
    %68 = vector.shape_cast %67 : vector<8x1x16xf32> to vector<8x16xf32>
    %69 = arith.maximumf %66, %68 : vector<8x16xf32>
    %c0_40 = arith.constant 0 : index
    %c8 = arith.constant 8 : index
    %c0_41 = arith.constant 0 : index
    %70 = vector.load %arg2[%c0_40, %c8, %c0_41] : memref<8x16x16xf32, #tpu.memory_space<vmem>>, vector<8x1x16xf32>
    %71 = vector.shape_cast %70 : vector<8x1x16xf32> to vector<8x16xf32>
    %72 = arith.maximumf %69, %71 : vector<8x16xf32>
    %cst_42 = arith.constant 0.000000e+00 : f32
    %73 = vector.broadcast %cst_42 : f32 to vector<8x1xf32>
    %74 = tpu.concatenate %72, %73 in 1 : vector<8x16xf32>, vector<8x1xf32> -> vector<8x17xf32>
    %75 = vector.extract_strided_slice %74 {offsets = [0, 0], sizes = [8, 15], strides = [1, 1]} : vector<8x17xf32> to vector<8x15xf32>
    %76 = vector.extract_strided_slice %74 {offsets = [0, 1], sizes = [8, 15], strides = [1, 1]} : vector<8x17xf32> to vector<8x15xf32>
    %77 = arith.maximumf %75, %76 : vector<8x15xf32>
    %78 = vector.extract_strided_slice %74 {offsets = [0, 2], sizes = [8, 15], strides = [1, 1]} : vector<8x17xf32> to vector<8x15xf32>
    %79 = arith.maximumf %77, %78 : vector<8x15xf32>
    %cst_43 = arith.constant dense<0.000000e+00> : vector<8x8xf32>
    %80 = tpu.matmul %79, %6, %cst_43 {dimension_numbers = #tpu.dot_dimension_numbers<[1], [0], [0], [1], [0, 0, 1, 1], [], []>, precision = #tpu.contract_precision<fp32>} : vector<8x15xf32>, vector<15x8xf32>, vector<8x8xf32> -> vector<8x8xf32>
    %c0_44 = arith.constant 0 : index
    %c3_45 = arith.constant 3 : index
    %c0_46 = arith.constant 0 : index
    %81 = vector.load %arg3[%c0_44, %c3_45, %c0_46] : memref<8x8x8xf32, #tpu.memory_space<vmem>>, vector<8x1x8xf32>
    %82 = vector.shape_cast %81 : vector<8x1x8xf32> to vector<8x8xf32>
    %83 = vector.shape_cast %80 : vector<8x8xf32> to vector<8x1x8xf32>
    tpu.vector_store %arg3[%c0_44, %c3_45, %c0_46], %83 {strides = array<i32>} : memref<8x8x8xf32, #tpu.memory_space<vmem>>, vector<8x1x8xf32>,
    %c0_47 = arith.constant 0 : index
    %c8_48 = arith.constant 8 : index
    %c0_49 = arith.constant 0 : index
    %84 = vector.load %arg2[%c0_47, %c8_48, %c0_49] : memref<8x16x16xf32, #tpu.memory_space<vmem>>, vector<8x1x16xf32>
    %85 = vector.shape_cast %84 : vector<8x1x16xf32> to vector<8x16xf32>
    %c0_50 = arith.constant 0 : index
    %c9 = arith.constant 9 : index
    %c0_51 = arith.constant 0 : index
    %86 = vector.load %arg2[%c0_50, %c9, %c0_51] : memref<8x16x16xf32, #tpu.memory_space<vmem>>, vector<8x1x16xf32>
    %87 = vector.shape_cast %86 : vector<8x1x16xf32> to vector<8x16xf32>
    %88 = arith.maximumf %85, %87 : vector<8x16xf32>
    %c0_52 = arith.constant 0 : index
    %c10 = arith.constant 10 : index
    %c0_53 = arith.constant 0 : index
    %89 = vector.load %arg2[%c0_52, %c10, %c0_53] : memref<8x16x16xf32, #tpu.memory_space<vmem>>, vector<8x1x16xf32>
    %90 = vector.shape_cast %89 : vector<8x1x16xf32> to vector<8x16xf32>
    %91 = arith.maximumf %88, %90 : vector<8x16xf32>
    %cst_54 = arith.constant 0.000000e+00 : f32
    %92 = vector.broadcast %cst_54 : f32 to vector<8x1xf32>
    %93 = tpu.concatenate %91, %92 in 1 : vector<8x16xf32>, vector<8x1xf32> -> vector<8x17xf32>
    %94 = vector.extract_strided_slice %93 {offsets = [0, 0], sizes = [8, 15], strides = [1, 1]} : vector<8x17xf32> to vector<8x15xf32>
    %95 = vector.extract_strided_slice %93 {offsets = [0, 1], sizes = [8, 15], strides = [1, 1]} : vector<8x17xf32> to vector<8x15xf32>
    %96 = arith.maximumf %94, %95 : vector<8x15xf32>
    %97 = vector.extract_strided_slice %93 {offsets = [0, 2], sizes = [8, 15], strides = [1, 1]} : vector<8x17xf32> to vector<8x15xf32>
    %98 = arith.maximumf %96, %97 : vector<8x15xf32>
    %cst_55 = arith.constant dense<0.000000e+00> : vector<8x8xf32>
    %99 = tpu.matmul %98, %6, %cst_55 {dimension_numbers = #tpu.dot_dimension_numbers<[1], [0], [0], [1], [0, 0, 1, 1], [], []>, precision = #tpu.contract_precision<fp32>} : vector<8x15xf32>, vector<15x8xf32>, vector<8x8xf32> -> vector<8x8xf32>
    %c0_56 = arith.constant 0 : index
    %c4_57 = arith.constant 4 : index
    %c0_58 = arith.constant 0 : index
    %100 = vector.load %arg3[%c0_56, %c4_57, %c0_58] : memref<8x8x8xf32, #tpu.memory_space<vmem>>, vector<8x1x8xf32>
    %101 = vector.shape_cast %100 : vector<8x1x8xf32> to vector<8x8xf32>
    %102 = vector.shape_cast %99 : vector<8x8xf32> to vector<8x1x8xf32>
    tpu.vector_store %arg3[%c0_56, %c4_57, %c0_58], %102 {strides = array<i32>} : memref<8x8x8xf32, #tpu.memory_space<vmem>>, vector<8x1x8xf32>,
    %c0_59 = arith.constant 0 : index
    %c10_60 = arith.constant 10 : index
    %c0_61 = arith.constant 0 : index
    %103 = vector.load %arg2[%c0_59, %c10_60, %c0_61] : memref<8x16x16xf32, #tpu.memory_space<vmem>>, vector<8x1x16xf32>
    %104 = vector.shape_cast %103 : vector<8x1x16xf32> to vector<8x16xf32>
    %c0_62 = arith.constant 0 : index
    %c11 = arith.constant 11 : index
    %c0_63 = arith.constant 0 : index
    %105 = vector.load %arg2[%c0_62, %c11, %c0_63] : memref<8x16x16xf32, #tpu.memory_space<vmem>>, vector<8x1x16xf32>
    %106 = vector.shape_cast %105 : vector<8x1x16xf32> to vector<8x16xf32>
    %107 = arith.maximumf %104, %106 : vector<8x16xf32>
    %c0_64 = arith.constant 0 : index
    %c12 = arith.constant 12 : index
    %c0_65 = arith.constant 0 : index
    %108 = vector.load %arg2[%c0_64, %c12, %c0_65] : memref<8x16x16xf32, #tpu.memory_space<vmem>>, vector<8x1x16xf32>
    %109 = vector.shape_cast %108 : vector<8x1x16xf32> to vector<8x16xf32>
    %110 = arith.maximumf %107, %109 : vector<8x16xf32>
    %cst_66 = arith.constant 0.000000e+00 : f32
    %111 = vector.broadcast %cst_66 : f32 to vector<8x1xf32>
    %112 = tpu.concatenate %110, %111 in 1 : vector<8x16xf32>, vector<8x1xf32> -> vector<8x17xf32>
    %113 = vector.extract_strided_slice %112 {offsets = [0, 0], sizes = [8, 15], strides = [1, 1]} : vector<8x17xf32> to vector<8x15xf32>
    %114 = vector.extract_strided_slice %112 {offsets = [0, 1], sizes = [8, 15], strides = [1, 1]} : vector<8x17xf32> to vector<8x15xf32>
    %115 = arith.maximumf %113, %114 : vector<8x15xf32>
    %116 = vector.extract_strided_slice %112 {offsets = [0, 2], sizes = [8, 15], strides = [1, 1]} : vector<8x17xf32> to vector<8x15xf32>
    %117 = arith.maximumf %115, %116 : vector<8x15xf32>
    %cst_67 = arith.constant dense<0.000000e+00> : vector<8x8xf32>
    %118 = tpu.matmul %117, %6, %cst_67 {dimension_numbers = #tpu.dot_dimension_numbers<[1], [0], [0], [1], [0, 0, 1, 1], [], []>, precision = #tpu.contract_precision<fp32>} : vector<8x15xf32>, vector<15x8xf32>, vector<8x8xf32> -> vector<8x8xf32>
    %c0_68 = arith.constant 0 : index
    %c5_69 = arith.constant 5 : index
    %c0_70 = arith.constant 0 : index
    %119 = vector.load %arg3[%c0_68, %c5_69, %c0_70] : memref<8x8x8xf32, #tpu.memory_space<vmem>>, vector<8x1x8xf32>
    %120 = vector.shape_cast %119 : vector<8x1x8xf32> to vector<8x8xf32>
    %121 = vector.shape_cast %118 : vector<8x8xf32> to vector<8x1x8xf32>
    tpu.vector_store %arg3[%c0_68, %c5_69, %c0_70], %121 {strides = array<i32>} : memref<8x8x8xf32, #tpu.memory_space<vmem>>, vector<8x1x8xf32>,
    %c0_71 = arith.constant 0 : index
    %c12_72 = arith.constant 12 : index
    %c0_73 = arith.constant 0 : index
    %122 = vector.load %arg2[%c0_71, %c12_72, %c0_73] : memref<8x16x16xf32, #tpu.memory_space<vmem>>, vector<8x1x16xf32>
    %123 = vector.shape_cast %122 : vector<8x1x16xf32> to vector<8x16xf32>
    %c0_74 = arith.constant 0 : index
    %c13 = arith.constant 13 : index
    %c0_75 = arith.constant 0 : index
    %124 = vector.load %arg2[%c0_74, %c13, %c0_75] : memref<8x16x16xf32, #tpu.memory_space<vmem>>, vector<8x1x16xf32>
    %125 = vector.shape_cast %124 : vector<8x1x16xf32> to vector<8x16xf32>
    %126 = arith.maximumf %123, %125 : vector<8x16xf32>
    %c0_76 = arith.constant 0 : index
    %c14 = arith.constant 14 : index
    %c0_77 = arith.constant 0 : index
    %127 = vector.load %arg2[%c0_76, %c14, %c0_77] : memref<8x16x16xf32, #tpu.memory_space<vmem>>, vector<8x1x16xf32>
    %128 = vector.shape_cast %127 : vector<8x1x16xf32> to vector<8x16xf32>
    %129 = arith.maximumf %126, %128 : vector<8x16xf32>
    %cst_78 = arith.constant 0.000000e+00 : f32
    %130 = vector.broadcast %cst_78 : f32 to vector<8x1xf32>
    %131 = tpu.concatenate %129, %130 in 1 : vector<8x16xf32>, vector<8x1xf32> -> vector<8x17xf32>
    %132 = vector.extract_strided_slice %131 {offsets = [0, 0], sizes = [8, 15], strides = [1, 1]} : vector<8x17xf32> to vector<8x15xf32>
    %133 = vector.extract_strided_slice %131 {offsets = [0, 1], sizes = [8, 15], strides = [1, 1]} : vector<8x17xf32> to vector<8x15xf32>
    %134 = arith.maximumf %132, %133 : vector<8x15xf32>
    %135 = vector.extract_strided_slice %131 {offsets = [0, 2], sizes = [8, 15], strides = [1, 1]} : vector<8x17xf32> to vector<8x15xf32>
    %136 = arith.maximumf %134, %135 : vector<8x15xf32>
    %cst_79 = arith.constant dense<0.000000e+00> : vector<8x8xf32>
    %137 = tpu.matmul %136, %6, %cst_79 {dimension_numbers = #tpu.dot_dimension_numbers<[1], [0], [0], [1], [0, 0, 1, 1], [], []>, precision = #tpu.contract_precision<fp32>} : vector<8x15xf32>, vector<15x8xf32>, vector<8x8xf32> -> vector<8x8xf32>
    %c0_80 = arith.constant 0 : index
    %c6_81 = arith.constant 6 : index
    %c0_82 = arith.constant 0 : index
    %138 = vector.load %arg3[%c0_80, %c6_81, %c0_82] : memref<8x8x8xf32, #tpu.memory_space<vmem>>, vector<8x1x8xf32>
    %139 = vector.shape_cast %138 : vector<8x1x8xf32> to vector<8x8xf32>
    %140 = vector.shape_cast %137 : vector<8x8xf32> to vector<8x1x8xf32>
    tpu.vector_store %arg3[%c0_80, %c6_81, %c0_82], %140 {strides = array<i32>} : memref<8x8x8xf32, #tpu.memory_space<vmem>>, vector<8x1x8xf32>,
    %c0_83 = arith.constant 0 : index
    %c14_84 = arith.constant 14 : index
    %c0_85 = arith.constant 0 : index
    %141 = vector.load %arg2[%c0_83, %c14_84, %c0_85] : memref<8x16x16xf32, #tpu.memory_space<vmem>>, vector<8x1x16xf32>
    %142 = vector.shape_cast %141 : vector<8x1x16xf32> to vector<8x16xf32>
    %c0_86 = arith.constant 0 : index
    %c15 = arith.constant 15 : index
    %c0_87 = arith.constant 0 : index
    %143 = vector.load %arg2[%c0_86, %c15, %c0_87] : memref<8x16x16xf32, #tpu.memory_space<vmem>>, vector<8x1x16xf32>
    %144 = vector.shape_cast %143 : vector<8x1x16xf32> to vector<8x16xf32>
    %145 = arith.maximumf %142, %144 : vector<8x16xf32>
    %146 = arith.maximumf %145, %7 : vector<8x16xf32>
    %cst_88 = arith.constant 0.000000e+00 : f32
    %147 = vector.broadcast %cst_88 : f32 to vector<8x1xf32>
    %148 = tpu.concatenate %146, %147 in 1 : vector<8x16xf32>, vector<8x1xf32> -> vector<8x17xf32>
    %149 = vector.extract_strided_slice %148 {offsets = [0, 0], sizes = [8, 15], strides = [1, 1]} : vector<8x17xf32> to vector<8x15xf32>
    %150 = vector.extract_strided_slice %148 {offsets = [0, 1], sizes = [8, 15], strides = [1, 1]} : vector<8x17xf32> to vector<8x15xf32>
    %151 = arith.maximumf %149, %150 : vector<8x15xf32>
    %152 = vector.extract_strided_slice %148 {offsets = [0, 2], sizes = [8, 15], strides = [1, 1]} : vector<8x17xf32> to vector<8x15xf32>
    %153 = arith.maximumf %151, %152 : vector<8x15xf32>
    %cst_89 = arith.constant dense<0.000000e+00> : vector<8x8xf32>
    %154 = tpu.matmul %153, %6, %cst_89 {dimension_numbers = #tpu.dot_dimension_numbers<[1], [0], [0], [1], [0, 0, 1, 1], [], []>, precision = #tpu.contract_precision<fp32>} : vector<8x15xf32>, vector<15x8xf32>, vector<8x8xf32> -> vector<8x8xf32>
    %c0_90 = arith.constant 0 : index
    %c7_91 = arith.constant 7 : index
    %c0_92 = arith.constant 0 : index
    %155 = vector.load %arg3[%c0_90, %c7_91, %c0_92] : memref<8x8x8xf32, #tpu.memory_space<vmem>>, vector<8x1x8xf32>
    %156 = vector.shape_cast %155 : vector<8x1x8xf32> to vector<8x8xf32>
    %157 = vector.shape_cast %154 : vector<8x8xf32> to vector<8x1x8xf32>
    tpu.vector_store %arg3[%c0_90, %c7_91, %c0_92], %157 {strides = array<i32>} : memref<8x8x8xf32, #tpu.memory_space<vmem>>, vector<8x1x8xf32>,
    return
  }
  func.func @transform_0(%arg0: i32, %arg1: i32) -> (i32, i32, i32) {
    %c0_i32 = arith.constant 0 : i32
    %c0_i32_0 = arith.constant 0 : i32
    %c0_i32_1 = arith.constant 0 : i32
    return %arg0, %c0_i32, %c0_i32_0 : i32, i32, i32
  }
  func.func @transform_1(%arg0: i32, %arg1: i32) -> (i32, i32, i32) {
    %c0_i32 = arith.constant 0 : i32
    %c0_i32_0 = arith.constant 0 : i32
    return %arg0, %arg1, %c0_i32 : i32, i32, i32
  }
}

</mosaic_0001>

<bundles_post_ra>
// kernel: tpu_custom_call.1
= control target key start
LH: loop header
LB: loop body
LE: loop exit
PB: predicated region body
PF: predicated region fallthrough
CT: control target
= control target key end

     0   :  { %6 = vsyncpa [#allocation3], 0  ;;  %s2676_s0 = inlined_call_operand.hbm [shape: f32[8,16,16], index: 0, kind: input, shape index: {}]   ;;  %s2677_s1 = inlined_call_operand.hbm [shape: f32[8,8,8], index: 1, kind: output, shape index: {}]  }
   0x1   :  { %7 = vsyncpa [#allocation4], 0  ;;  %s12_s8 = sshll.u32 %s2676_s0, 4  ;;  %s2236_s9 = smov [#allocation2]   ;;  %s13_s8 = int_to_ptr.hbm [resolvable:$true] %s12_s8 }
   0x2   :  { %s14_s10 = sshll.u32 %s2236_s9, 4  ;;  %s2237_s11 = smov 128   ;;  %s15_s10 = int_to_ptr.vmem [resolvable:$true] %s14_s10 }
   0x3   :  { %s2238_s12 = smov 8  }
   0x4   :  { %20 = dma.hbm_to_vmem [thread:$0]  %s13_s8, 2048, %s15_s10, [#allocation3], %s2237_s11, %s2237_s11, %s2238_s12  }
   0x5   :  { %2232 = dma.done.wait [#allocation3], 2048  }
   0x6   :  { %2233 = vsyncadd [#allocation3], 4294965248  ;;  %vm86_vm0 = vcmask 1041409   ;;  %vm89_vm1 = vcmask 1042434   ;;  %v309_v0 = vld [vmem:[#allocation2 + $0x2] sm:$0x1] }
   0x7   :  { %v310_v1 = vld [vmem:[#allocation2 + $0x12] sm:$0x1]  ;;  %v311_v2 = vld [vmem:[#allocation2 + $0x22] sm:$0x1]  ;;  %vm92_vm2 = vcmask 1043459   ;;  %vm95_vm3 = vcmask 1044484  }
   0x8   :  { %v312_v3 = vld [vmem:[#allocation2 + $0x32] sm:$0x1]  ;;  %v313_v4 = vld [vmem:[#allocation2 + $0x42] sm:$0x1]  ;;  %v317_v8 = vld [vmem:[#allocation2 + $0x3] sm:$0x1] }
   0x9   :  { %v314_v5 = vld [vmem:[#allocation2 + $0x52] sm:$0x1]  ;;  %v315_v6 = vld [vmem:[#allocation2 + $0x62] sm:$0x1]  ;;  %vm98_vm4 = vcmask 1045509   ;;  %v325_v12 = vmax.f32 %v309_v0, %v317_v8  ;;  %vm101_vm5 = vcmask 1046534  }
   0xa   :  { %v316_v7 = vld [vmem:[#allocation2 + $0x72] sm:$0x1]  ;;  %v318_v9 = vld [vmem:[#allocation2 + $0x13] sm:$0x1]  ;;  %v319_v10 = vld [vmem:[#allocation2 + $0x23] sm:$0x1] }
   0xb   :  { %v320_v11 = vld [vmem:[#allocation2 + $0x33] sm:$0x1]  ;;  %v321_v13 = vld [vmem:[#allocation2 + $0x43] sm:$0x1]  ;;  %v326_v16 = vmax.f32 %v310_v1, %v318_v9  ;;  %v327_v17 = vmax.f32 %v311_v2, %v319_v10  ;;  %vm104_vm6 = vcmask 1047559   ;;  %vm107_vm7 = vcmask 130048  }
   0xc   :  { %v322_v14 = vld [vmem:[#allocation2 + $0x53] sm:$0x1]  ;;  %v323_v15 = vld [vmem:[#allocation2 + $0x63] sm:$0x1]  ;;  %v328_v18 = vmax.f32 %v312_v3, %v320_v11  ;;  %v329_v20 = vmax.f32 %v313_v4, %v321_v13  ;;  %v333_v23 = vld [vmem:[#allocation2 + $0x4] sm:$0x1] }
   0xd   :  { %v324_v19 = vld [vmem:[#allocation2 + $0x73] sm:$0x1]  ;;  %v330_v21 = vmax.f32 %v314_v5, %v322_v14  ;;  %v331_v22 = vmax.f32 %v315_v6, %v323_v15  ;;  %v334_v24 = vld [vmem:[#allocation2 + $0x14] sm:$0x1]  ;;  %v335_v26 = vld [vmem:[#allocation2 + $0x24] sm:$0x1]  ;;  %v341_v29 = vmax.f32 %v325_v12, %v333_v23 }
   0xe   :  { %v332_v25 = vmax.f32 %v316_v7, %v324_v19  ;;  %v336_v27 = vld [vmem:[#allocation2 + $0x34] sm:$0x1]  ;;  %v337_v28 = vld [vmem:[#allocation2 + $0x44] sm:$0x1]  ;;  %v342_v30 = vmax.f32 %v326_v16, %v334_v24  ;;  %v343_v34 = vmax.f32 %v327_v17, %v335_v26  ;;  %v37_v41 = vld [vmem:[#allocation2] sm:$0x1] }
   0xf   :  { %v338_v31 = vld [vmem:[#allocation2 + $0x54] sm:$0x1]  ;;  %v339_v32 = vld [vmem:[#allocation2 + $0x64] sm:$0x1]  ;;  %v344_v35 = vmax.f32 %v328_v18, %v336_v27  ;;  %v345_v36 = vmax.f32 %v329_v20, %v337_v28  ;;  %v38_v42 = vld [vmem:[#allocation2 + $0x10] sm:$0x1] }
  0x10   :  { %v340_v33 = vld [vmem:[#allocation2 + $0x74] sm:$0x1]  ;;  %v346_v37 = vmax.f32 %v330_v21, %v338_v31  ;;  %v347_v38 = vmax.f32 %v331_v22, %v339_v32  ;;  %v357_v40 = vrot.slane %v342_v30, 7  ;;  %v359_v43 = vrot.slane %v343_v34, 6  ;;  %v39_v46 = vld [vmem:[#allocation2 + $0x20] sm:$0x1] }
  0x11   :  { %v348_v39 = vmax.f32 %v332_v25, %v340_v33  ;;  %v361_v44 = vrot.slane %v344_v35, 5  ;;  %v363_v45 = vrot.slane %v345_v36, 4  ;;  %v40_v51 = vld [vmem:[#allocation2 + $0x30] sm:$0x1]  ;;  %v41_v53 = vld [vmem:[#allocation2 + $0x40] sm:$0x1] }
  0x12   :  { %v358_v47 = vsel %vm86_vm0, %v357_v40, %v341_v29  ;;  %v365_v48 = vrot.slane %v346_v37, 3  ;;  %v367_v49 = vrot.slane %v347_v38, 2  ;;  %v42_v54 = vld [vmem:[#allocation2 + $0x50] sm:$0x1]  ;;  %v43_v55 = vld [vmem:[#allocation2 + $0x60] sm:$0x1] }
  0x13   :  { %v369_v50 = vrot.slane %v348_v39, 1  ;;  %v360_v52 = vsel %vm89_vm1, %v359_v43, %v358_v47  ;;  %v44_v57 = vld [vmem:[#allocation2 + $0x70] sm:$0x1]  ;;  %v45_v58 = vld [vmem:[#allocation2 + $0x1] sm:$0x1]  ;;  %s2239_s0 = smov 127  }
  0x14   :  { %v362_v56 = vsel %vm92_vm2, %v361_v44, %v360_v52  ;;  %v46_v59 = vld [vmem:[#allocation2 + $0x11] sm:$0x1]  ;;  %v47_v61 = vld [vmem:[#allocation2 + $0x21] sm:$0x1]  ;;  %v53_v0 = vmax.f32 %v37_v41, %v45_v58  ;;  %v61_v13 = vld [vmem:[#allocation2 + $0x2] sm:$0x1] }
  0x15   :  { %v364_v60 = vsel %vm95_vm3, %v363_v45, %v362_v56  ;;  %v48_v62 = vld [vmem:[#allocation2 + $0x31] sm:$0x1]  ;;  %v49_v63 = vld [vmem:[#allocation2 + $0x41] sm:$0x1]  ;;  %v54_v1 = vmax.f32 %v38_v42, %v46_v59  ;;  %v55_v6 = vmax.f32 %v39_v46, %v47_v61  ;;  %v62_v14 = vld [vmem:[#allocation2 + $0x12] sm:$0x1] }
  0x16   :  { %v366_v2 = vsel %vm98_vm4, %v365_v48, %v364_v60  ;;  %v50_v3 = vld [vmem:[#allocation2 + $0x51] sm:$0x1]  ;;  %v51_v4 = vld [vmem:[#allocation2 + $0x61] sm:$0x1]  ;;  %v56_v7 = vmax.f32 %v40_v51, %v48_v62  ;;  %v57_v8 = vmax.f32 %v41_v53, %v49_v63  ;;  %v63_v15 = vld [vmem:[#allocation2 + $0x22] sm:$0x1]  ;;  %v69_v20 = vmax.f32 %v53_v0, %v61_v13 }
  0x17   :  { %v52_v5 = vld [vmem:[#allocation2 + $0x71] sm:$0x1]  ;;  %v368_v9 = vsel %vm101_vm5, %v367_v49, %v366_v2  ;;  %v58_v10 = vmax.f32 %v42_v54, %v50_v3  ;;  %v59_v11 = vmax.f32 %v43_v55, %v51_v4  ;;  %v64_v17 = vld [vmem:[#allocation2 + $0x32] sm:$0x1]  ;;  %v65_v18 = vld [vmem:[#allocation2 + $0x42] sm:$0x1]  ;;  %v70_v21 = vmax.f32 %v54_v1, %v62_v14 }
  0x18   :  { %v60_v12 = vmax.f32 %v44_v57, %v52_v5  ;;  %v370_v16 = vsel %vm104_vm6, %v369_v50, %v368_v9  ;;  %v66_v19 = vld [vmem:[#allocation2 + $0x52] sm:$0x1]  ;;  %v71_v22 = vmax.f32 %v55_v6, %v63_v15  ;;  %v67_v24 = vld [vmem:[#allocation2 + $0x62] sm:$0x1]  ;;  %v72_v26 = vmax.f32 %v56_v7, %v64_v17  ;;  %v825_v33 = vld [vmem:[#allocation2 + $0x6] sm:$0x1] }
  0x19   :  { %v2268_v23 = vsel %vm107_vm7, %v370_v16, 0.0  ;;  %v68_v25 = vld [vmem:[#allocation2 + $0x72] sm:$0x1]  ;;  %v73_v27 = vmax.f32 %v57_v8, %v65_v18  ;;  %v74_v28 = vmax.f32 %v58_v10, %v66_v19  ;;  %v75_v29 = vmax.f32 %v59_v11, %v67_v24  ;;  %v826_v34 = vld [vmem:[#allocation2 + $0x16] sm:$0x1]  ;;  %s2240_s13 = smov 126  }
  0x1a   :  { %374 = vrot.lane.b32.xlu1 %v2268_v23, %s2239_s0  ;;  %v76_v30 = vmax.f32 %v60_v12, %v68_v25  ;;  %v85_v31 = vrot.slane %v70_v21, 7  ;;  %v88_v32 = vrot.slane %v71_v22, 6  ;;  %v91_v35 = vrot.slane %v72_v26, 5  ;;  %v827_v38 = vld [vmem:[#allocation2 + $0x26] sm:$0x1]  ;;  %s2243_s14 = smov [#allocation5]  }
  0x1b   :  { %v94_v36 = vrot.slane %v73_v27, 4  ;;  %v97_v37 = vrot.slane %v74_v28, 3  ;;  %v100_v40 = vrot.slane %v75_v29, 2  ;;  %v828_v42 = vld [vmem:[#allocation2 + $0x36] sm:$0x1]  ;;  %vm122_vm9 = vcmask 1046528  }
  0x1c   :  { %v87_v39 = vsel %vm86_vm0, %v85_v31, %v69_v20  ;;  %v103_v41 = vrot.slane %v76_v30, 1  ;;  %v829_v43 = vld [vmem:[#allocation2 + $0x46] sm:$0x1]  ;;  %v830_v45 = vld [vmem:[#allocation2 + $0x56] sm:$0x1]  ;;  %vm118_vm11 = vcmask 121856  }
  0x1d   :  { %v90_v44 = vsel %vm89_vm1, %v88_v32, %v87_v39  ;;  %v831_v46 = vld [vmem:[#allocation2 + $0x66] sm:$0x1]  ;;  %v832_v47 = vld [vmem:[#allocation2 + $0x76] sm:$0x1]  ;;  %v833_v49 = vld [vmem:[#allocation2 + $0x7] sm:$0x1] }
  0x1e   :  { %v93_v48 = vsel %vm92_vm2, %v91_v35, %v90_v44  ;;  %v834_v50 = vld [vmem:[#allocation2 + $0x17] sm:$0x1]  ;;  %v835_v51 = vld [vmem:[#allocation2 + $0x27] sm:$0x1]  ;;  %v841_v56 = vmax.f32 %v825_v33, %v833_v49  ;;  %v849_v1 = vld [vmem:[#allocation2 + $0x8] sm:$0x1] }
  0x1f   :  { %v96_v52 = vsel %vm95_vm3, %v94_v36, %v93_v48  ;;  %v836_v53 = vld [vmem:[#allocation2 + $0x37] sm:$0x1]  ;;  %v837_v54 = vld [vmem:[#allocation2 + $0x47] sm:$0x1]  ;;  %v842_v57 = vmax.f32 %v826_v34, %v834_v50  ;;  %v843_v58 = vmax.f32 %v827_v38, %v835_v51  ;;  %v850_v5 = vld [vmem:[#allocation2 + $0x18] sm:$0x1] }
  0x20   :  { %v838_v55 = vld [vmem:[#allocation2 + $0x57] sm:$0x1]  ;;  %v99_v59 = vsel %vm98_vm4, %v97_v37, %v96_v52  ;;  %v839_v60 = vld [vmem:[#allocation2 + $0x67] sm:$0x1]  ;;  %v844_v62 = vmax.f32 %v828_v42, %v836_v53  ;;  %v845_v63 = vmax.f32 %v829_v43, %v837_v54  ;;  %v851_v6 = vld [vmem:[#allocation2 + $0x28] sm:$0x1]  ;;  %v857_v8 = vmax.f32 %v841_v56, %v849_v1 }
  0x21   :  { %v840_v61 = vld [vmem:[#allocation2 + $0x77] sm:$0x1]  ;;  %v846_v0 = vmax.f32 %v830_v45, %v838_v55  ;;  %v102_v2 = vsel %vm101_vm5, %v100_v40, %v99_v59  ;;  %v847_v3 = vmax.f32 %v831_v46, %v839_v60  ;;  %v852_v7 = vld [vmem:[#allocation2 + $0x38] sm:$0x1]  ;;  %v853_v10 = vld [vmem:[#allocation2 + $0x48] sm:$0x1]  ;;  %v858_v13 = vmax.f32 %v842_v57, %v850_v5 }
  0x22   :  { %v848_v4 = vmax.f32 %v832_v47, %v840_v61  ;;  %v105_v9 = vsel %vm104_vm6, %v103_v41, %v102_v2  ;;  %378 = vrot.lane.b32.xlu1 %v2268_v23, %s2240_s13  ;;  %v854_v11 = vld [vmem:[#allocation2 + $0x58] sm:$0x1]  ;;  %v855_v12 = vld [vmem:[#allocation2 + $0x68] sm:$0x1]  ;;  %v859_v14 = vmax.f32 %v843_v58, %v851_v6  ;;  %v860_v15 = vmax.f32 %v844_v62, %v852_v7  ;;  %v567_v26 = vld [vmem:[#allocation2 + $0x4] sm:$0x1] }
  0x23   :  { %v2282_v16 = vsel %vm107_vm7, %v105_v9, 0.0  ;;  %v856_v17 = vld [vmem:[#allocation2 + $0x78] sm:$0x1]  ;;  %v861_v18 = vmax.f32 %v845_v63, %v853_v10  ;;  %v862_v19 = vmax.f32 %v846_v0, %v854_v11  ;;  %v863_v20 = vmax.f32 %v847_v3, %v855_v12  ;;  %v568_v29 = vld [vmem:[#allocation2 + $0x14] sm:$0x1]  ;;  %s2111_s15 = sshll.u32 %s2243_s14, 4  ;;  %s2112_s15 = int_to_ptr.vmem [resolvable:$true] %s2111_s15 }
  0x24   :  { %110 = vrot.lane.b32.xlu0 %v2282_v16, %s2239_s0  ;;  %v864_v21 = vmax.f32 %v848_v4, %v856_v17  ;;  %v873_v22 = vrot.slane %v858_v13, 7  ;;  %v875_v24 = vrot.slane %v859_v14, 6  ;;  %v877_v25 = vrot.slane %v860_v15, 5  ;;  %v569_v30 = vld [vmem:[#allocation2 + $0x24] sm:$0x1]  ;;  %s2113_s18 = sshll.u32 %s2677_s1, 4  ;;  %s2114_s18 = int_to_ptr.hbm [resolvable:$true] %s2113_s18 }
  0x25   :  { %v879_v27 = vrot.slane %v861_v18, 4  ;;  %v881_v28 = vrot.slane %v862_v19, 3  ;;  %v883_v32 = vrot.slane %v863_v20, 2  ;;  %v570_v34 = vld [vmem:[#allocation2 + $0x34] sm:$0x1]  ;;  %vm300_vm12 = vcmask 57344  }
  0x26   :  { %v874_v31 = vsel %vm86_vm0, %v873_v22, %v857_v8  ;;  %v885_v33 = vrot.slane %v864_v21, 1  ;;  %v571_v35 = vld [vmem:[#allocation2 + $0x44] sm:$0x1]  ;;  %v572_v37 = vld [vmem:[#allocation2 + $0x54] sm:$0x1] }
  0x27   :  { %v876_v36 = vsel %vm89_vm1, %v875_v24, %v874_v31  ;;  %v573_v38 = vld [vmem:[#allocation2 + $0x64] sm:$0x1]  ;;  %v574_v39 = vld [vmem:[#allocation2 + $0x74] sm:$0x1]  ;;  %v575_v41 = vld [vmem:[#allocation2 + $0x5] sm:$0x1] }
  0x28   :  { %v878_v40 = vsel %vm92_vm2, %v877_v25, %v876_v36  ;;  %v576_v42 = vld [vmem:[#allocation2 + $0x15] sm:$0x1]  ;;  %v577_v43 = vld [vmem:[#allocation2 + $0x25] sm:$0x1]  ;;  %v583_v48 = vmax.f32 %v567_v26, %v575_v41  ;;  %v591_v57 = vld [vmem:[#allocation2 + $0x6] sm:$0x1] }
  0x29   :  { %v880_v44 = vsel %vm95_vm3, %v879_v27, %v878_v40  ;;  %v578_v45 = vld [vmem:[#allocation2 + $0x35] sm:$0x1]  ;;  %v579_v46 = vld [vmem:[#allocation2 + $0x45] sm:$0x1]  ;;  %v584_v49 = vmax.f32 %v568_v29, %v576_v42  ;;  %v585_v50 = vmax.f32 %v569_v30, %v577_v43  ;;  %v592_v61 = vld [vmem:[#allocation2 + $0x16] sm:$0x1] }
  0x2a   :  { %v580_v47 = vld [vmem:[#allocation2 + $0x55] sm:$0x1]  ;;  %v882_v51 = vsel %vm98_vm4, %v881_v28, %v880_v44  ;;  %v581_v52 = vld [vmem:[#allocation2 + $0x65] sm:$0x1]  ;;  %v586_v54 = vmax.f32 %v570_v34, %v578_v45  ;;  %v587_v55 = vmax.f32 %v571_v35, %v579_v46  ;;  %v593_v62 = vld [vmem:[#allocation2 + $0x26] sm:$0x1]  ;;  %v599_v0 = vmax.f32 %v583_v48, %v591_v57 }
  0x2b   :  { %v582_v53 = vld [vmem:[#allocation2 + $0x75] sm:$0x1]  ;;  %v588_v56 = vmax.f32 %v572_v37, %v580_v47  ;;  %v884_v58 = vsel %vm101_vm5, %v883_v32, %v882_v51  ;;  %v589_v59 = vmax.f32 %v573_v38, %v581_v52  ;;  %v594_v63 = vld [vmem:[#allocation2 + $0x36] sm:$0x1]  ;;  %v595_v2 = vld [vmem:[#allocation2 + $0x46] sm:$0x1]  ;;  %v600_v5 = vmax.f32 %v584_v49, %v592_v61 }
  0x2c   :  { %v590_v60 = vmax.f32 %v574_v39, %v582_v53  ;;  %114 = vrot.lane.b32.xlu0 %v2282_v16, %s2240_s13  ;;  %v886_v1 = vsel %vm104_vm6, %v885_v33, %v884_v58  ;;  %v596_v3 = vld [vmem:[#allocation2 + $0x56] sm:$0x1]  ;;  %v597_v4 = vld [vmem:[#allocation2 + $0x66] sm:$0x1]  ;;  %v601_v6 = vmax.f32 %v585_v50, %v593_v62  ;;  %v602_v7 = vmax.f32 %v586_v54, %v594_v63  ;;  %v1083_v18 = vld [vmem:[#allocation2 + $0x8] sm:$0x1] }
  0x2d   :  { %v2296_v8 = vsel %vm107_vm7, %v886_v1, 0.0  ;;  %v598_v9 = vld [vmem:[#allocation2 + $0x76] sm:$0x1]  ;;  %v603_v10 = vmax.f32 %v587_v55, %v595_v2  ;;  %v604_v11 = vmax.f32 %v588_v56, %v596_v3  ;;  %v605_v12 = vmax.f32 %v589_v59, %v597_v4  ;;  %v1084_v21 = vld [vmem:[#allocation2 + $0x18] sm:$0x1] }
  0x2e   :  { %894 = vrot.lane.b32.xlu1 %v2296_v8, %s2240_s13  ;;  %v606_v13 = vmax.f32 %v590_v60, %v598_v9  ;;  %v615_v14 = vrot.slane %v600_v5, 7  ;;  %v617_v15 = vrot.slane %v601_v6, 6  ;;  %v619_v17 = vrot.slane %v602_v7, 5  ;;  %v1085_v22 = vld [vmem:[#allocation2 + $0x28] sm:$0x1] }
  0x2f   :  { %v621_v19 = vrot.slane %v603_v10, 4  ;;  %v623_v20 = vrot.slane %v604_v11, 3  ;;  %v625_v25 = vrot.slane %v605_v12, 2  ;;  %v1086_v27 = vld [vmem:[#allocation2 + $0x38] sm:$0x1] }
  0x30   :  { %v616_v24 = vsel %vm86_vm0, %v615_v14, %v599_v0  ;;  %v627_v26 = vrot.slane %v606_v13, 1  ;;  %v1087_v28 = vld [vmem:[#allocation2 + $0x48] sm:$0x1]  ;;  %v1088_v30 = vld [vmem:[#allocation2 + $0x58] sm:$0x1] }
  0x31   :  { %v618_v29 = vsel %vm89_vm1, %v617_v15, %v616_v24  ;;  %v1089_v31 = vld [vmem:[#allocation2 + $0x68] sm:$0x1]  ;;  %v1090_v32 = vld [vmem:[#allocation2 + $0x78] sm:$0x1]  ;;  %v1091_v34 = vld [vmem:[#allocation2 + $0x9] sm:$0x1] }
  0x32   :  { %v620_v33 = vsel %vm92_vm2, %v619_v17, %v618_v29  ;;  %v1092_v35 = vld [vmem:[#allocation2 + $0x19] sm:$0x1]  ;;  %v1093_v36 = vld [vmem:[#allocation2 + $0x29] sm:$0x1]  ;;  %v1099_v41 = vmax.f32 %v1083_v18, %v1091_v34  ;;  %v1107_v50 = vld [vmem:[#allocation2 + $0xa] sm:$0x1] }
  0x33   :  { %v622_v37 = vsel %vm95_vm3, %v621_v19, %v620_v33  ;;  %v1094_v38 = vld [vmem:[#allocation2 + $0x39] sm:$0x1]  ;;  %v1095_v39 = vld [vmem:[#allocation2 + $0x49] sm:$0x1]  ;;  %v1100_v42 = vmax.f32 %v1084_v21, %v1092_v35  ;;  %v1101_v43 = vmax.f32 %v1085_v22, %v1093_v36  ;;  %v1108_v54 = vld [vmem:[#allocation2 + $0x1a] sm:$0x1] }
  0x34   :  { %v1096_v40 = vld [vmem:[#allocation2 + $0x59] sm:$0x1]  ;;  %890 = vrot.lane.b32.xlu0 %v2296_v8, %s2239_s0  ;;  %v624_v44 = vsel %vm98_vm4, %v623_v20, %v622_v37  ;;  %v1097_v45 = vld [vmem:[#allocation2 + $0x69] sm:$0x1]  ;;  %v1102_v47 = vmax.f32 %v1086_v27, %v1094_v38  ;;  %v1103_v48 = vmax.f32 %v1087_v28, %v1095_v39  ;;  %v1109_v55 = vld [vmem:[#allocation2 + $0x2a] sm:$0x1]  ;;  %v1115_v57 = vmax.f32 %v1099_v41, %v1107_v50 }
  0x35   :  { %v1098_v46 = vld [vmem:[#allocation2 + $0x79] sm:$0x1]  ;;  %v1104_v49 = vmax.f32 %v1088_v30, %v1096_v40  ;;  %v626_v51 = vsel %vm101_vm5, %v625_v25, %v624_v44  ;;  %v1105_v52 = vmax.f32 %v1089_v31, %v1097_v45  ;;  %v1110_v56 = vld [vmem:[#allocation2 + $0x3a] sm:$0x1]  ;;  %v1111_v59 = vld [vmem:[#allocation2 + $0x4a] sm:$0x1]  ;;  %v1116_v62 = vmax.f32 %v1100_v42, %v1108_v54 }
  0x36   :  { %v1106_v53 = vmax.f32 %v1090_v32, %v1098_v46  ;;  %v628_v58 = vsel %vm104_vm6, %v627_v26, %v626_v51  ;;  %v1112_v60 = vld [vmem:[#allocation2 + $0x5a] sm:$0x1]  ;;  %v1113_v61 = vld [vmem:[#allocation2 + $0x6a] sm:$0x1]  ;;  %v1117_v63 = vmax.f32 %v1101_v43, %v1109_v55  ;;  %v1118_v0 = vmax.f32 %v1102_v47, %v1110_v56  ;;  %v1349_v28 = vld [vmem:[#allocation2 + $0xb] sm:$0x1] }
  0x37   :  { %v2310_v1 = vsel %vm107_vm7, %v628_v58, 0.0  ;;  %v1114_v2 = vld [vmem:[#allocation2 + $0x7a] sm:$0x1]  ;;  %v1119_v3 = vmax.f32 %v1103_v48, %v1111_v59  ;;  %v1120_v4 = vmax.f32 %v1104_v49, %v1112_v60  ;;  %v1121_v5 = vmax.f32 %v1105_v52, %v1113_v61  ;;  %v1341_v11 = vld [vmem:[#allocation2 + $0xa] sm:$0x1] }
  0x38   :  { %632 = vrot.lane.b32.xlu2 %v2310_v1, %s2239_s0  ;;  %v1122_v6 = vmax.f32 %v1106_v53, %v1114_v2  ;;  %v1131_v7 = vrot.slane %v1116_v62, 7  ;;  %v1133_v9 = vrot.slane %v1117_v63, 6  ;;  %v1135_v10 = vrot.slane %v1118_v0, 5  ;;  %v1342_v14 = vld [vmem:[#allocation2 + $0x1a] sm:$0x1] }
  0x39   :  { %v1137_v12 = vrot.slane %v1119_v3, 4  ;;  %v1139_v13 = vrot.slane %v1120_v4, 3  ;;  %v1343_v15 = vld [vmem:[#allocation2 + $0x2a] sm:$0x1]  ;;  %v1141_v18 = vrot.slane %v1121_v5, 2  ;;  %v1357_v35 = vmax.f32 %v1341_v11, %v1349_v28 }
  0x3a   :  { %v1132_v17 = vsel %vm86_vm0, %v1131_v7, %v1115_v57  ;;  %v1143_v19 = vrot.slane %v1122_v6, 1  ;;  %v1344_v20 = vld [vmem:[#allocation2 + $0x3a] sm:$0x1]  ;;  %v1345_v21 = vld [vmem:[#allocation2 + $0x4a] sm:$0x1] }
  0x3b   :  { %v1134_v22 = vsel %vm89_vm1, %v1133_v9, %v1132_v17  ;;  %v1346_v24 = vld [vmem:[#allocation2 + $0x5a] sm:$0x1]  ;;  %v1347_v25 = vld [vmem:[#allocation2 + $0x6a] sm:$0x1]  ;;  %v1350_v29 = vld [vmem:[#allocation2 + $0x1b] sm:$0x1] }
  0x3c   :  { %v1348_v26 = vld [vmem:[#allocation2 + $0x7a] sm:$0x1]  ;;  %v1136_v27 = vsel %vm92_vm2, %v1135_v10, %v1134_v22  ;;  %v1351_v30 = vld [vmem:[#allocation2 + $0x2b] sm:$0x1]  ;;  %v1352_v32 = vld [vmem:[#allocation2 + $0x3b] sm:$0x1]  ;;  %v1358_v36 = vmax.f32 %v1342_v14, %v1350_v29 }
  0x3d   :  { %v1138_v31 = vsel %vm95_vm3, %v1137_v12, %v1136_v27  ;;  %v1353_v33 = vld [vmem:[#allocation2 + $0x4b] sm:$0x1]  ;;  %v1354_v34 = vld [vmem:[#allocation2 + $0x5b] sm:$0x1]  ;;  %v1359_v37 = vmax.f32 %v1343_v15, %v1351_v30  ;;  %v1360_v41 = vmax.f32 %v1344_v20, %v1352_v32  ;;  %v1365_v44 = vld [vmem:[#allocation2 + $0xc] sm:$0x1] }
  0x3e   :  { %v1140_v38 = vsel %vm98_vm4, %v1139_v13, %v1138_v31  ;;  %v1355_v39 = vld [vmem:[#allocation2 + $0x6b] sm:$0x1]  ;;  %v1356_v40 = vld [vmem:[#allocation2 + $0x7b] sm:$0x1]  ;;  %v1361_v42 = vmax.f32 %v1345_v21, %v1353_v33  ;;  %v1362_v43 = vmax.f32 %v1346_v24, %v1354_v34  ;;  %v1366_v48 = vld [vmem:[#allocation2 + $0x1c] sm:$0x1]  ;;  %v1373_v51 = vmax.f32 %v1357_v35, %v1365_v44 }
  0x3f   :  { %v1142_v45 = vsel %vm101_vm5, %v1141_v18, %v1140_v38  ;;  %v1363_v46 = vmax.f32 %v1347_v25, %v1355_v39  ;;  %v1364_v47 = vmax.f32 %v1348_v26, %v1356_v40  ;;  %v1367_v49 = vld [vmem:[#allocation2 + $0x2c] sm:$0x1]  ;;  %v1368_v50 = vld [vmem:[#allocation2 + $0x3c] sm:$0x1]  ;;  %v1374_v56 = vmax.f32 %v1358_v36, %v1366_v48  ;;  %v1607_v22 = vld [vmem:[#allocation2 + $0xd] sm:$0x1] }
  0x40   :  { %636 = vrot.lane.b32.xlu2 %v2310_v1, %s2240_s13  ;;  %v1144_v52 = vsel %vm104_vm6, %v1143_v19, %v1142_v45  ;;  %v1369_v53 = vld [vmem:[#allocation2 + $0x4c] sm:$0x1]  ;;  %v1370_v54 = vld [vmem:[#allocation2 + $0x5c] sm:$0x1]  ;;  %v1375_v57 = vmax.f32 %v1359_v37, %v1367_v49  ;;  %v1376_v58 = vmax.f32 %v1360_v41, %v1368_v50  ;;  %v1608_v24 = vld [vmem:[#allocation2 + $0x1d] sm:$0x1] }
  0x41   :  { %v1371_v55 = vld [vmem:[#allocation2 + $0x6c] sm:$0x1]  ;;  %v2324_v59 = vsel %vm107_vm7, %v1144_v52, 0.0  ;;  %v1372_v60 = vld [vmem:[#allocation2 + $0x7c] sm:$0x1]  ;;  %v1377_v61 = vmax.f32 %v1361_v42, %v1369_v53  ;;  %v1378_v62 = vmax.f32 %v1362_v43, %v1370_v54  ;;  %v1389_v2 = vrot.slane %v1374_v56, 7 }
  0x42   :  { %v1379_v63 = vmax.f32 %v1363_v46, %v1371_v55  ;;  %1152 = vrot.lane.b32.xlu0 %v2324_v59, %s2240_s13  ;;  %v1380_v0 = vmax.f32 %v1364_v47, %v1372_v60  ;;  %v1391_v3 = vrot.slane %v1375_v57, 6  ;;  %v1393_v4 = vrot.slane %v1376_v58, 5  ;;  %v1599_v5 = vld [vmem:[#allocation2 + $0xc] sm:$0x1]  ;;  %v1600_v9 = vld [vmem:[#allocation2 + $0x1c] sm:$0x1] }
  0x43   :  { %v1395_v6 = vrot.slane %v1377_v61, 4  ;;  %v1397_v7 = vrot.slane %v1378_v62, 3  ;;  %v1601_v10 = vld [vmem:[#allocation2 + $0x2c] sm:$0x1]  ;;  %v1390_v11 = vsel %vm86_vm0, %v1389_v2, %v1373_v51  ;;  %v1602_v14 = vld [vmem:[#allocation2 + $0x3c] sm:$0x1]  ;;  %v1615_v30 = vmax.f32 %v1599_v5, %v1607_v22 }
  0x44   :  { %v1399_v12 = vrot.slane %v1379_v63, 2  ;;  %v1401_v13 = vrot.slane %v1380_v0, 1  ;;  %v1603_v15 = vld [vmem:[#allocation2 + $0x4c] sm:$0x1]  ;;  %v1392_v17 = vsel %vm89_vm1, %v1391_v3, %v1390_v11  ;;  %v1604_v18 = vld [vmem:[#allocation2 + $0x5c] sm:$0x1]  ;;  %v1616_v31 = vmax.f32 %v1600_v9, %v1608_v24 }
  0x45   :  { %v1605_v19 = vld [vmem:[#allocation2 + $0x6c] sm:$0x1]  ;;  %v1606_v20 = vld [vmem:[#allocation2 + $0x7c] sm:$0x1]  ;;  %v1394_v21 = vsel %vm92_vm2, %v1393_v4, %v1392_v17  ;;  %v1609_v25 = vld [vmem:[#allocation2 + $0x2d] sm:$0x1] }
  0x46   :  { %v1396_v26 = vsel %vm95_vm3, %v1395_v6, %v1394_v21  ;;  %v1610_v27 = vld [vmem:[#allocation2 + $0x3d] sm:$0x1]  ;;  %v1611_v28 = vld [vmem:[#allocation2 + $0x4d] sm:$0x1]  ;;  %v1617_v32 = vmax.f32 %v1601_v10, %v1609_v25  ;;  %v1623_v39 = vld [vmem:[#allocation2 + $0xe] sm:$0x1] }
  0x47   :  { %v1612_v29 = vld [vmem:[#allocation2 + $0x5d] sm:$0x1]  ;;  %v1398_v33 = vsel %vm98_vm4, %v1397_v7, %v1396_v26  ;;  %v1613_v34 = vld [vmem:[#allocation2 + $0x6d] sm:$0x1]  ;;  %v1618_v36 = vmax.f32 %v1602_v14, %v1610_v27  ;;  %v1619_v37 = vmax.f32 %v1603_v15, %v1611_v28  ;;  %v1624_v43 = vld [vmem:[#allocation2 + $0x1e] sm:$0x1]  ;;  %v1631_v46 = vmax.f32 %v1615_v30, %v1623_v39 }
  0x48   :  { %1148 = vrot.lane.b32.xlu2 %v2324_v59, %s2239_s0  ;;  %v1614_v35 = vld [vmem:[#allocation2 + $0x7d] sm:$0x1]  ;;  %v1620_v38 = vmax.f32 %v1604_v18, %v1612_v29  ;;  %v1400_v40 = vsel %vm101_vm5, %v1399_v12, %v1398_v33  ;;  %v1621_v41 = vmax.f32 %v1605_v19, %v1613_v34  ;;  %v1625_v44 = vld [vmem:[#allocation2 + $0x2e] sm:$0x1]  ;;  %v1626_v45 = vld [vmem:[#allocation2 + $0x3e] sm:$0x1]  ;;  %v1632_v51 = vmax.f32 %v1616_v31, %v1624_v43 }
  0x49   :  { %v1622_v42 = vmax.f32 %v1606_v20, %v1614_v35  ;;  %v1402_v47 = vsel %vm104_vm6, %v1401_v13, %v1400_v40  ;;  %v1627_v48 = vld [vmem:[#allocation2 + $0x4e] sm:$0x1]  ;;  %v1628_v49 = vld [vmem:[#allocation2 + $0x5e] sm:$0x1]  ;;  %v1633_v52 = vmax.f32 %v1617_v32, %v1625_v44  ;;  %v1634_v53 = vmax.f32 %v1618_v36, %v1626_v45  ;;  %v1865_v18 = vld [vmem:[#allocation2 + $0xf] sm:$0x1] }
  0x4a   :  { %v1629_v50 = vld [vmem:[#allocation2 + $0x6e] sm:$0x1]  ;;  %v2338_v54 = vsel %vm107_vm7, %v1402_v47, 0.0  ;;  %v1630_v55 = vld [vmem:[#allocation2 + $0x7e] sm:$0x1]  ;;  %v1635_v56 = vmax.f32 %v1619_v37, %v1627_v48  ;;  %v1636_v57 = vmax.f32 %v1620_v38, %v1628_v49  ;;  %v1647_v61 = vrot.slane %v1632_v51, 7 }
  0x4b   :  { %v1637_v58 = vmax.f32 %v1621_v41, %v1629_v50  ;;  %1406 = vrot.lane.b32.xlu1 %v2338_v54, %s2239_s0  ;;  %v1638_v60 = vmax.f32 %v1622_v42, %v1630_v55  ;;  %v1649_v62 = vrot.slane %v1633_v52, 6  ;;  %v1651_v63 = vrot.slane %v1634_v53, 5  ;;  %v1857_v0 = vld [vmem:[#allocation2 + $0xe] sm:$0x1]  ;;  %v1858_v4 = vld [vmem:[#allocation2 + $0x1e] sm:$0x1] }
  0x4c   :  { %v1653_v2 = vrot.slane %v1635_v56, 4  ;;  %v1655_v3 = vrot.slane %v1636_v57, 3  ;;  %v1859_v5 = vld [vmem:[#allocation2 + $0x2e] sm:$0x1]  ;;  %v1648_v6 = vsel %vm86_vm0, %v1647_v61, %v1631_v46  ;;  %v1860_v10 = vld [vmem:[#allocation2 + $0x3e] sm:$0x1]  ;;  %v1873_v26 = vmax.f32 %v1857_v0, %v1865_v18 }
  0x4d   :  { %v1657_v7 = vrot.slane %v1637_v58, 2  ;;  %v1659_v9 = vrot.slane %v1638_v60, 1  ;;  %v1861_v11 = vld [vmem:[#allocation2 + $0x4e] sm:$0x1]  ;;  %v1650_v12 = vsel %vm89_vm1, %v1649_v62, %v1648_v6  ;;  %v1862_v13 = vld [vmem:[#allocation2 + $0x5e] sm:$0x1] }
  0x4e   :  { %v1863_v14 = vld [vmem:[#allocation2 + $0x6e] sm:$0x1]  ;;  %v1864_v15 = vld [vmem:[#allocation2 + $0x7e] sm:$0x1]  ;;  %v1652_v17 = vsel %vm92_vm2, %v1651_v63, %v1650_v12  ;;  %v1866_v19 = vld [vmem:[#allocation2 + $0x1f] sm:$0x1] }
  0x4f   :  { %v1867_v20 = vld [vmem:[#allocation2 + $0x2f] sm:$0x1]  ;;  %v1654_v21 = vsel %vm95_vm3, %v1653_v2, %v1652_v17  ;;  %v1868_v22 = vld [vmem:[#allocation2 + $0x3f] sm:$0x1]  ;;  %v1874_v27 = vmax.f32 %v1858_v4, %v1866_v19  ;;  %v1881_v38 = vmax.f32 %v1873_v26, 0.0  ;;  %v25_v2 = vlaneseq }
  0x50   :  { %1410 = vrot.lane.b32.xlu2 %v2338_v54, %s2240_s13  ;;  %v1869_v24 = vld [vmem:[#allocation2 + $0x4f] sm:$0x1]  ;;  %v1870_v25 = vld [vmem:[#allocation2 + $0x5f] sm:$0x1]  ;;  %v1875_v28 = vmax.f32 %v1859_v5, %v1867_v20  ;;  %v1656_v29 = vsel %vm98_vm4, %v1655_v3, %v1654_v21  ;;  %v1876_v32 = vmax.f32 %v1860_v10, %v1868_v22  ;;  %v2242_v22 = vmov 1.0  }
  0x51   :  { %v1871_v30 = vld [vmem:[#allocation2 + $0x6f] sm:$0x1]  ;;  %v1872_v31 = vld [vmem:[#allocation2 + $0x7f] sm:$0x1]  ;;  %v1877_v33 = vmax.f32 %v1861_v11, %v1869_v24  ;;  %v1878_v34 = vmax.f32 %v1862_v13, %v1870_v25  ;;  %v1658_v35 = vsel %vm101_vm5, %v1657_v7, %v1656_v29  ;;  %v1882_v40 = vmax.f32 %v1874_v27, 0.0 }
  0x52   :  { %v1879_v36 = vmax.f32 %v1863_v14, %v1871_v30  ;;  %v1880_v37 = vmax.f32 %v1864_v15, %v1872_v31  ;;  %v1660_v39 = vsel %vm104_vm6, %v1659_v9, %v1658_v35  ;;  %v1883_v41 = vmax.f32 %v1875_v28, 0.0 }
  0x53   :  { %v1884_v42 = vmax.f32 %v1876_v32, 0.0  ;;  %v2352_v43 = vsel %vm107_vm7, %v1660_v39, 0.0  ;;  %v1885_v44 = vmax.f32 %v1877_v33, 0.0  ;;  %v1886_v45 = vmax.f32 %v1878_v34, 0.0 }
  0x54   :  { %v1887_v46 = vmax.f32 %v1879_v36, 0.0  ;;  %1664 = vrot.lane.b32.xlu0 %v2352_v43, %s2239_s0  ;;  %1668 = vrot.lane.b32.xlu1 %v2352_v43, %s2240_s13  ;;  %v1888_v47 = vmax.f32 %v1880_v37, 0.0  ;;  %v1897_v48 = vrot.slane %v1882_v40, 7  ;;  %v1899_v49 = vrot.slane %v1883_v41, 6 }
  0x55   :  { %v1901_v50 = vrot.slane %v1884_v42, 5  ;;  %v1903_v51 = vrot.slane %v1885_v44, 4  ;;  %v1905_v53 = vrot.slane %v1886_v45, 3  ;;  %v26_v3 = vshrl.u32 %v25_v2, 7 }
  0x56   :  { %v1898_v52 = vsel %vm86_vm0, %v1897_v48, %v1881_v38  ;;  %v1907_v56 = vrot.slane %v1887_v46, 2  ;;  %v1909_v58 = vrot.slane %v1888_v47, 1  ;;  %v29_v4 = vand.u32 127, %v25_v2 }
  0x57   :  { %v1900_v55 = vsel %vm89_vm1, %v1899_v49, %v1898_v52  ;;  %v27_v5 = vadd.s32 8, %v26_v3  ;;  %v2241_v7 = vmov 0.0  }
  0x58   :  { %v1902_v57 = vsel %vm92_vm2, %v1901_v50, %v1900_v55  ;;  %v30_v6 = vmul.u32 2, %v29_v4 }
  0x59   :  { %v1904_v60 = vsel %vm95_vm3, %v1903_v51, %v1902_v57 }
  0x5a   :  { %v1906_v61 = vsel %vm98_vm4, %v1905_v53, %v1904_v60  ;;  %vm32_vm8 = vcmp.eq.s32.totalorder %v27_v5, %v30_v6  ;;  %vm2382_vm10 = vcmp.eq.s32.totalorder %v26_v3, %v30_v6 }
  0x5b   :  { %v1908_v62 = vsel %vm101_vm5, %v1907_v56, %v1906_v61  ;;  %v2372_v9 = vsel %vm32_vm8, 1.0, %v2241_v7  ;;  %v2126_v13 = vsel %vm2382_vm10, 1.0, %v2241_v7 }
  0x5c   :  { %v1910_v63 = vsel %vm104_vm6, %v1909_v58, %v1908_v62  ;;  %v124_v10 = vsel %vm122_vm9, %v2372_v9, 0  ;;  %2130 = vmatpush.msk.msra.mxu3 %vm122_vm9, %v2372_v9  ;;  %2128 = vmatpush.msk.msra.mxu0 %vm122_vm9, %v2372_v9  ;;  %v2391_v15 = vsub.f32 %v2126_v13, %v2126_v13 }
  0x5d   :  { %v2366_v0 = vsel %vm107_vm7, %v1910_v63, 0.0  ;;  %v2380_v11 = vsub.f32 %v124_v10, %v124_v10 }
  0x5e   :  { %1918 = vrot.lane.b32.xlu0 %v2366_v0, %s2240_s13  ;;  %1914 = vrot.lane.b32.xlu2 %v2366_v0, %s2239_s0  ;;  %v2397_v18 = vand.u32 4294901760, %v2391_v15 }
  0x5f   :  { %v2389_v14 = vand.u32 4294901760, %v2380_v11  ;;  %200 = vmatpush.msra.mxu2 %v2380_v11  ;;  %2131 = vmatpush.msk.msra.mxu3 %vm2382_vm10, %v2242_v22 }
  0x60   :  { %v176_v20 = vsub.f32 %v2391_v15, %v2397_v18  ;;  %2129 = vmatpush.msk.msra.mxu0 %vm2382_vm10, %v2242_v22 }
  0x61   :  { %v170_v17 = vsub.f32 %v2380_v11, %v2389_v14  ;;  %203 = vmatpush.msra.mxu2 %v2391_v15 }
  0x62   :  { %v2407_v21 = vand.u32 4294901760, %v176_v20  ;;  %252 = vmatpush.msrb.mxu0 %v2389_v14 }
  0x63   :  { %2134 = vmatpush.msk.msrb.mxu2 %vm122_vm9, %v2372_v9  ;;  %v2402_v19 = vand.u32 4294901760, %v170_v17 }
  0x64   :  { %256 = vmatpush.msrb.mxu0 %v2397_v18 }
  0x65   :  { %172 = vmatpush.msra.mxu1 %v2402_v19  ;;  %431 = vmatpush.msrb.mxu3 %v2402_v19 }
  0x66   :  { %2135 = vmatpush.msk.msrb.mxu2 %vm2382_vm10, %v2242_v22 }
  0x67   :  { %178 = vmatpush.msra.mxu1 %v2407_v21  ;;  %437 = vmatpush.msrb.mxu3 %v2407_v21 }
  0x69   :  { %2132 = vmatpush.msk.msrb.mxu1 %vm122_vm9, %v2372_v9 }
  0x6b   :  { %2133 = vmatpush.msk.msrb.mxu1 %vm2382_vm10, %v2242_v22 }
  0x8c   :  { %v375_v24 = vpop.permute.xlu1 %374 }
  0x8d   :  { %v377_v25 = vmax.f32 %v2268_v23, %v375_v24 }
  0x92   :  { %v633_v33 = vpop.permute.xlu2 %632 }
  0x93   :  { %v635_v41 = vmax.f32 %v2310_v1, %v633_v33 }
  0x94   :  { %v379_v26 = vpop.permute.xlu1 %378 }
  0x95   :  { %v381_v27 = vmax.f32 %v377_v25, %v379_v26 }
  0x96   :  { %v111_v28 = vpop.permute.xlu0 %110 }
  0x97   :  { %v383_v29 = vsel %vm118_vm11, %v381_v27, 0  ;;  %v113_v31 = vmax.f32 %v2282_v16, %v111_v28 }
  0x98   :  { %v403_v30 = vand.u32 4294901760, %v383_v29 }
  0x9a   :  { %v404_v35 = vsub.f32 %v383_v29, %v403_v30  ;;  %v637_v42 = vpop.permute.xlu2 %636 }
  0x9b   :  { %v639_v1 = vmax.f32 %v635_v41, %v637_v42 }
  0x9c   :  { %v405_v39 = vand.u32 4294901760, %v404_v35 }
  0x9d   :  { %v641_v49 = vsel %vm118_vm11, %v639_v1, 0 }
  0x9e   :  { %v115_v32 = vpop.permute.xlu0 %114  ;;  %v406_v45 = vsub.f32 %v404_v35, %v405_v39  ;;  %v661_v51 = vand.u32 4294901760, %v641_v49 }
  0x9f   :  { %v117_v34 = vmax.f32 %v113_v31, %v115_v32 }
  0xa0   :  { %v895_v46 = vpop.permute.xlu1 %894  ;;  %v662_v53 = vsub.f32 %v641_v49, %v661_v51 }
  0xa1   :  { %v120_v36 = vsel %vm118_vm11, %v117_v34, 0 }
  0xa2   :  { %v144_v37 = vand.u32 4294901760, %v120_v36  ;;  %v1149_v56 = vpop.permute.xlu2 %1148  ;;  %v663_v58 = vand.u32 4294901760, %v662_v53 }
  0xa3   :  { %v1151_v63 = vmax.f32 %v2324_v59, %v1149_v56 }
  0xa4   :  { %v145_v38 = vsub.f32 %v120_v36, %v144_v37  ;;  %180 = vmatmul.f32.vlgmr.msra.gmra.mxu1 %v144_v37  ;;  %v664_v60 = vsub.f32 %v662_v53, %v663_v58 }
  0xa5   :  { %2136 = vmatpush.msk.msra.mxu1 %vm122_vm9, %v2372_v9 }
  0xa6   :  { %206 = vmatmul.f32.vlgmr.msra.gmra.mxu2 %v145_v38  ;;  %v146_v23 = vand.u32 4294901760, %v145_v38  ;;  %v891_v40 = vpop.permute.xlu0 %890  ;;  %v665_v5 = vand.u32 4294901760, %v664_v60 }
  0xa7   :  { %511 = vmatpush.msra.mxu2 %v2389_v14  ;;  %2137 = vmatpush.msk.msra.mxu1 %vm2382_vm10, %v2242_v22  ;;  %v893_v16 = vmax.f32 %v2296_v8, %v891_v40  ;;  %v407_v8 = vand.u32 4294901760, %v406_v45 }
  0xa8   :  { %231 = vmatmul.f32.vlgmr.msra.gmra.mxu3 %v146_v23  ;;  %v147_v44 = vsub.f32 %v145_v38, %v146_v23 }
  0xa9   :  { %2138 = vmatpush.msk.msra.mxu3 %vm122_vm9, %v2372_v9  ;;  %515 = vmatpush.msra.mxu2 %v2397_v18  ;;  %v897_v48 = vmax.f32 %v893_v16, %v895_v46 }
  0xaa   :  { %v148_v47 = vand.u32 4294901760, %v147_v44  ;;  %v1411_v4 = vpop.permute.xlu2 %1410 }
  0xab   :  { %2139 = vmatpush.msk.msra.mxu3 %vm2382_vm10, %v2242_v22  ;;  %v899_v50 = vsel %vm118_vm11, %v897_v48, 0 }
  0xac   :  { %149 = vmatmul.f32.vlgmr.msra.gmra.mxu0 %v148_v47  ;;  %281 = vmatmul.f32.vlgmr.msrb.gmra.mxu1 %v144_v37  ;;  %v2456_v52 = vand.u32 4294901760, %v899_v50 }
  0xad   :  { %459 = vmatpush.msra.mxu0 %v2380_v11  ;;  %689 = vmatpush.msrb.mxu1 %v2402_v19 }
  0xae   :  { %408 = vmatmul.f32.vlgmr.msrb.gmra.mxu2 %v407_v8  ;;  %v2466_v55 = vsub.f32 %v899_v50, %v2456_v52 }
  0xaf   :  { %462 = vmatpush.msra.mxu0 %v2391_v15  ;;  %717 = vmatpush.msrb.mxu2 %v2380_v11 }
  0xb0   :  { %439 = vmatmul.f32.vlgmr.msrb.gmra.mxu3 %v403_v30  ;;  %695 = vmatpush.msrb.mxu1 %v2407_v21  ;;  %v921_v57 = vand.u32 4294901760, %v2466_v55 }
  0xb1   :  { %2142 = vmatpush.msk.msrb.mxu3 %vm122_vm9, %v2372_v9  ;;  %720 = vmatpush.msrb.mxu2 %v2391_v15 }
  0xb2   :  { %v922_v61 = vsub.f32 %v2466_v55, %v921_v57 }
  0xb3   :  { %2143 = vmatpush.msk.msrb.mxu3 %vm2382_vm10, %v2242_v22 }
  0xb4   :  { %258 = vmatmul.f32.vlgmr.msrb.gmra.mxu0 %v144_v37  ;;  %490 = vmatmul.f32.vlgmr.msra.gmra.mxu1 %v405_v39  ;;  %v1153_v3 = vpop.permute.xlu0 %1152  ;;  %v923_v59 = vand.u32 4294901760, %v922_v61 }
  0xb5   :  { %2140 = vmatpush.msk.msrb.mxu0 %vm122_vm9, %v2372_v9  ;;  %2144 = vmatpush.msk.msra.mxu1 %vm122_vm9, %v2372_v9  ;;  %v1155_v6 = vmax.f32 %v1151_v63, %v1153_v3 }
  0xb6   :  { %517 = vmatmul.f32.vlgmr.msra.gmra.mxu2 %v403_v30 }
  0xb7   :  { %2141 = vmatpush.msk.msrb.mxu0 %vm2382_vm10, %v2242_v22  ;;  %2146 = vmatpush.msk.msra.mxu2 %vm122_vm9, %v2372_v9  ;;  %v1157_v7 = vsel %vm118_vm11, %v1155_v6, 0 }
  0xb8   :  { %540 = vmatmul.f32.vlgmr.msra.gmra.mxu3 %v403_v30  ;;  %2145 = vmatpush.msk.msra.mxu1 %vm2382_vm10, %v2242_v22  ;;  %v1177_v13 = vand.u32 4294901760, %v1157_v7  ;;  %v1915_v28 = vpop.permute.xlu2 %1914 }
  0xb9   :  { %947 = vmatpush.msra.mxu3 %v2402_v19  ;;  %2147 = vmatpush.msk.msra.mxu2 %vm2382_vm10, %v2242_v22  ;;  %v1917_v32 = vmax.f32 %v2366_v0, %v1915_v28 }
  0xba   :  { %v1178_v20 = vsub.f32 %v1157_v7, %v1177_v13 }
  0xbb   :  { %953 = vmatpush.msra.mxu3 %v2407_v21 }
  0xbc   :  { %465 = vmatmul.f32.vlgmr.msra.gmra.mxu0 %v404_v35  ;;  %697 = vmatmul.f32.vlgmr.msrb.gmra.mxu1 %v661_v51  ;;  %v1179_v27 = vand.u32 4294901760, %v1178_v20 }
  0xbd   :  { %769 = vmatpush.msra.mxu0 %v2389_v14  ;;  %2148 = vmatpush.msk.msrb.mxu1 %vm122_vm9, %v2372_v9  ;;  %v1407_v62 = vpop.permute.xlu1 %1406 }
  0xbe   :  { %723 = vmatmul.f32.vlgmr.msrb.gmra.mxu2 %v662_v53  ;;  %v1409_v2 = vmax.f32 %v2338_v54, %v1407_v62  ;;  %v1180_v29 = vsub.f32 %v1178_v20, %v1179_v27 }
  0xbf   :  { %773 = vmatpush.msra.mxu0 %v2397_v18  ;;  %1027 = vmatpush.msrb.mxu2 %v2389_v14 }
  0xc0   :  { %748 = vmatmul.f32.vlgmr.msrb.gmra.mxu3 %v663_v58  ;;  %2149 = vmatpush.msk.msrb.mxu1 %vm2382_vm10, %v2242_v22  ;;  %v1413_v54 = vmax.f32 %v1409_v2, %v1411_v4  ;;  %v1181_v35 = vand.u32 4294901760, %v1180_v29 }
  0xc1   :  { %2150 = vmatpush.msk.msrb.mxu3 %vm122_vm9, %v2372_v9  ;;  %1031 = vmatpush.msrb.mxu2 %v2397_v18 }
  0xc2   :  { %v1415_v10 = vsel %vm118_vm11, %v1413_v54, 0 }
  0xc3   :  { %2151 = vmatpush.msk.msrb.mxu3 %vm2382_vm10, %v2242_v22  ;;  %v2510_v17 = vand.u32 4294901760, %v1415_v10 }
  0xc4   :  { %666 = vmatmul.f32.vlgmr.msrb.gmra.mxu0 %v665_v5  ;;  %798 = vmatmul.f32.vlgmr.msra.gmra.mxu1 %v661_v51 }
  0xc5   :  { %975 = vmatpush.msrb.mxu0 %v2380_v11  ;;  %1205 = vmatpush.msra.mxu1 %v2402_v19  ;;  %v2521_v24 = vsub.f32 %v1415_v10, %v2510_v17 }
  0xc6   :  { %924 = vmatmul.f32.vlgmr.msra.gmra.mxu2 %v923_v59  ;;  %v1665_v25 = vpop.permute.xlu0 %1664  ;;  %v1669_v33 = vpop.permute.xlu1 %1668 }
  0xc7   :  { %978 = vmatpush.msrb.mxu0 %v2391_v15  ;;  %1233 = vmatpush.msra.mxu2 %v2380_v11  ;;  %v1437_v26 = vand.u32 4294901760, %v2521_v24  ;;  %v1667_v31 = vmax.f32 %v2352_v43, %v1665_v25 }
  0xc8   :  { %955 = vmatmul.f32.vlgmr.msra.gmra.mxu3 %v2456_v52  ;;  %1211 = vmatpush.msra.mxu1 %v2407_v21 }
  0xc9   :  { %2154 = vmatpush.msk.msra.mxu3 %vm122_vm9, %v2372_v9  ;;  %1236 = vmatpush.msra.mxu2 %v2391_v15  ;;  %v1438_v30 = vsub.f32 %v2521_v24, %v1437_v26  ;;  %v1671_v37 = vmax.f32 %v1667_v31, %v1669_v33 }
  0xcb   :  { %2155 = vmatpush.msk.msra.mxu3 %vm2382_vm10, %v2242_v22  ;;  %v1439_v36 = vand.u32 4294901760, %v1438_v30  ;;  %v1673_v0 = vsel %vm118_vm11, %v1671_v37, 0 }
  0xcc   :  { %775 = vmatmul.f32.vlgmr.msra.gmra.mxu0 %v661_v51  ;;  %1006 = vmatmul.f32.vlgmr.msrb.gmra.mxu1 %v921_v57  ;;  %v1693_v39 = vand.u32 4294901760, %v1673_v0 }
  0xcd   :  { %2152 = vmatpush.msk.msra.mxu0 %vm122_vm9, %v2372_v9  ;;  %2156 = vmatpush.msk.msrb.mxu1 %vm122_vm9, %v2372_v9 }
  0xce   :  { %1033 = vmatmul.f32.vlgmr.msrb.gmra.mxu2 %v2456_v52  ;;  %v1694_v40 = vsub.f32 %v1673_v0, %v1693_v39 }
  0xcf   :  { %2153 = vmatpush.msk.msra.mxu0 %vm2382_vm10, %v2242_v22  ;;  %2158 = vmatpush.msk.msrb.mxu2 %vm122_vm9, %v2372_v9 }
  0xd0   :  { %1056 = vmatmul.f32.vlgmr.msrb.gmra.mxu3 %v2456_v52  ;;  %2157 = vmatpush.msk.msrb.mxu1 %vm2382_vm10, %v2242_v22  ;;  %v1919_v34 = vpop.permute.xlu0 %1918  ;;  %v1695_v42 = vand.u32 4294901760, %v1694_v40 }
  0xd1   :  { %1463 = vmatpush.msrb.mxu3 %v2402_v19  ;;  %2159 = vmatpush.msk.msrb.mxu2 %vm2382_vm10, %v2242_v22  ;;  %v1921_v43 = vmax.f32 %v1917_v32, %v1919_v34 }
  0xd2   :  { %v1696_v44 = vsub.f32 %v1694_v40, %v1695_v42 }
  0xd3   :  { %1469 = vmatpush.msrb.mxu3 %v2407_v21  ;;  %v1923_v38 = vsel %vm118_vm11, %v1921_v43, 0 }
  0xd4   :  { %981 = vmatmul.f32.vlgmr.msrb.gmra.mxu0 %v2466_v55  ;;  %1213 = vmatmul.f32.vlgmr.msra.gmra.mxu1 %v1177_v13  ;;  %v1943_v23 = vand.u32 4294901760, %v1923_v38 }
  0xd5   :  { %1285 = vmatpush.msrb.mxu0 %v2389_v14  ;;  %2160 = vmatpush.msk.msra.mxu1 %vm122_vm9, %v2372_v9 }
  0xd6   :  { %1239 = vmatmul.f32.vlgmr.msra.gmra.mxu2 %v1178_v20  ;;  %v1944_v41 = vsub.f32 %v1923_v38, %v1943_v23 }
  0xd7   :  { %1289 = vmatpush.msrb.mxu0 %v2397_v18  ;;  %1543 = vmatpush.msra.mxu2 %v2389_v14 }
  0xd8   :  { %1264 = vmatmul.f32.vlgmr.msra.gmra.mxu3 %v1179_v27  ;;  %2161 = vmatpush.msk.msra.mxu1 %vm2382_vm10, %v2242_v22  ;;  %v1945_v16 = vand.u32 4294901760, %v1944_v41 }
  0xd9   :  { %2162 = vmatpush.msk.msra.mxu3 %vm122_vm9, %v2372_v9  ;;  %1547 = vmatpush.msra.mxu2 %v2397_v18 }
  0xda   :  { %v1946_v45 = vsub.f32 %v1944_v41, %v1945_v16 }
  0xdb   :  { %2163 = vmatpush.msk.msra.mxu3 %vm2382_vm10, %v2242_v22 }
  0xdc   :  { %1182 = vmatmul.f32.vlgmr.msra.gmra.mxu0 %v1181_v35  ;;  %1314 = vmatmul.f32.vlgmr.msrb.gmra.mxu1 %v1177_v13 }
  0xdd   :  { %1491 = vmatpush.msra.mxu0 %v2380_v11  ;;  %1721 = vmatpush.msrb.mxu1 %v2402_v19 }
  0xde   :  { %1440 = vmatmul.f32.vlgmr.msrb.gmra.mxu2 %v1439_v36 }
  0xdf   :  { %1494 = vmatpush.msra.mxu0 %v2391_v15  ;;  %1749 = vmatpush.msrb.mxu2 %v2380_v11 }
  0xe0   :  { %1471 = vmatmul.f32.vlgmr.msrb.gmra.mxu3 %v2510_v17  ;;  %1727 = vmatpush.msrb.mxu1 %v2407_v21 }
  0xe1   :  { %2166 = vmatpush.msk.msrb.mxu3 %vm122_vm9, %v2372_v9  ;;  %1752 = vmatpush.msrb.mxu2 %v2391_v15 }
  0xe3   :  { %2167 = vmatpush.msk.msrb.mxu3 %vm2382_vm10, %v2242_v22 }
  0xe4   :  { %1291 = vmatmul.f32.vlgmr.msrb.gmra.mxu0 %v1177_v13  ;;  %1522 = vmatmul.f32.vlgmr.msra.gmra.mxu1 %v1437_v26 }
  0xe5   :  { %2164 = vmatpush.msk.msrb.mxu0 %vm122_vm9, %v2372_v9  ;;  %2168 = vmatpush.msk.msra.mxu1 %vm122_vm9, %v2372_v9 }
  0xe6   :  { %1549 = vmatmul.f32.vlgmr.msra.gmra.mxu2 %v2510_v17 }
  0xe7   :  { %2165 = vmatpush.msk.msrb.mxu0 %vm2382_vm10, %v2242_v22  ;;  %2170 = vmatpush.msk.msra.mxu2 %vm122_vm9, %v2372_v9 }
  0xe8   :  { %1572 = vmatmul.f32.vlgmr.msra.gmra.mxu3 %v2510_v17  ;;  %2169 = vmatpush.msk.msra.mxu1 %vm2382_vm10, %v2242_v22 }
  0xe9   :  { %1971 = vmatpush.msra.mxu3 %v2402_v19  ;;  %2171 = vmatpush.msk.msra.mxu2 %vm2382_vm10, %v2242_v22  ;;  %v1697_v19 = vand.u32 4294901760, %v1696_v44 }
  0xeb   :  { %1977 = vmatpush.msra.mxu3 %v2407_v21  ;;  %v1947_v21 = vand.u32 4294901760, %v1946_v45 }
  0xec   :  { %1497 = vmatmul.f32.vlgmr.msra.gmra.mxu0 %v2521_v24  ;;  %1729 = vmatmul.f32.vlgmr.msrb.gmra.mxu1 %v1693_v39 }
  0xed   :  { %1801 = vmatpush.msra.mxu0 %v2389_v14  ;;  %2172 = vmatpush.msk.msrb.mxu1 %vm122_vm9, %v2372_v9 }
  0xee   :  { %1755 = vmatmul.f32.vlgmr.msrb.gmra.mxu2 %v1694_v40 }
  0xef   :  { %1805 = vmatpush.msra.mxu0 %v2397_v18  ;;  %2051 = vmatpush.msrb.mxu2 %v2389_v14 }
  0xf0   :  { %1780 = vmatmul.f32.vlgmr.msrb.gmra.mxu3 %v1695_v42  ;;  %2173 = vmatpush.msk.msrb.mxu1 %vm2382_vm10, %v2242_v22 }
  0xf1   :  { %2174 = vmatpush.msk.msrb.mxu3 %vm122_vm9, %v2372_v9  ;;  %2055 = vmatpush.msrb.mxu2 %v2397_v18 }
  0xf3   :  { %2175 = vmatpush.msk.msrb.mxu3 %vm2382_vm10, %v2242_v22 }
  0xf4   :  { %1698 = vmatmul.f32.vlgmr.msrb.gmra.mxu0 %v1697_v19  ;;  %1830 = vmatmul.f32.vlgmr.msra.gmra.mxu1 %v1693_v39 }
  0xf5   :  { %1999 = vmatpush.msrb.mxu0 %v2380_v11 }
  0xf6   :  { %1948 = vmatmul.f32.vlgmr.msra.gmra.mxu2 %v1947_v21 }
  0xf7   :  { %2002 = vmatpush.msrb.mxu0 %v2391_v15 }
  0xf8   :  { %1979 = vmatmul.f32.vlgmr.msra.gmra.mxu3 %v1943_v23 }
  0xfc   :  { %1807 = vmatmul.f32.vlgmr.msra.gmra.mxu0 %v1693_v39  ;;  %2030 = vmatmul.f32.vlgmr.msrb.gmra.mxu1 %v1945_v16 }
  0xfe   :  { %2057 = vmatmul.f32.vlgmr.msrb.gmra.mxu2 %v1943_v23 }
 0x100   :  { %2080 = vmatmul.f32.vlgmr.msrb.gmra.mxu3 %v1943_v23 }
 0x104   :  { %2005 = vmatmul.f32.vlgmr.msrb.gmra.mxu0 %v1944_v41 }
 0x121   :  { %v181_v9 = vpop.f32.mrf.mxu1 }
 0x129   :  { %v150_v14 = vpop.f32.mrf.mxu0  ;;  %v207_v18 = vpop.f32.mrf.mxu2 }
 0x12a   :  { %v182_v46 = vadd.f32 %v181_v9, %v150_v14  ;;  %v282_v47 = vpop.f32.mrf.mxu1 }
 0x12b   :  { %v232_v12 = vpop.f32.mrf.mxu3 }
 0x12c   :  { %v208_v22 = vadd.f32 %v207_v18, %v182_v46 }
 0x12e   :  { %v233_v1 = vadd.f32 %v232_v12, %v208_v22 }
 0x131   :  { %v259_v48 = vpop.f32.mrf.mxu0  ;;  %v409_v8 = vpop.f32.mrf.mxu2 }
 0x132   :  { %v260_v11 = vadd.f32 %v259_v48, %v233_v1  ;;  %v491_v49 = vpop.f32.mrf.mxu1 }
 0x133   :  { %v440_v15 = vpop.f32.mrf.mxu3 }
 0x134   :  { %v283_v50 = vadd.f32 %v282_v47, %v260_v11  ;;  %v441_v57 = vadd.f32 %v440_v15, %v409_v8 }
 0x136   :  { %v286_v51 = vrot.slane %v283_v50, 1  ;;  %v287_v52 = vrot.slane %v283_v50, 2  ;;  %v288_v53 = vrot.slane %v283_v50, 3  ;;  %301 = vst.msk [vmem:[#allocation5] sm:$0x1] %vm300_vm12, %v283_v50  ;;  %v289_v55 = vrot.slane %v283_v50, 4 }
 0x137   :  { %v290_v56 = vrot.slane %v283_v50, 5  ;;  %v291_v58 = vrot.slane %v283_v50, 6  ;;  %v292_v62 = vrot.slane %v283_v50, 7 }
 0x138   :  { %302 = vst.msk [vmem:[#allocation5 + $0x8] sm:$0x1] %vm300_vm12, %v286_v51 }
 0x139   :  { %303 = vst.msk [vmem:[#allocation5 + $0x10] sm:$0x1] %vm300_vm12, %v287_v52  ;;  %v466_v60 = vpop.f32.mrf.mxu0  ;;  %v518_v61 = vpop.f32.mrf.mxu2 }
 0x13a   :  { %304 = vst.msk [vmem:[#allocation5 + $0x18] sm:$0x1] %vm300_vm12, %v288_v53  ;;  %v467_v63 = vadd.f32 %v466_v60, %v441_v57  ;;  %v698_v2 = vpop.f32.mrf.mxu1 }
 0x13b   :  { %305 = vst.msk [vmem:[#allocation5 + $0x20] sm:$0x1] %vm300_vm12, %v289_v55  ;;  %v541_v3 = vpop.f32.mrf.mxu3 }
 0x13c   :  { %306 = vst.msk [vmem:[#allocation5 + $0x28] sm:$0x1] %vm300_vm12, %v290_v56  ;;  %v492_v4 = vadd.f32 %v491_v49, %v467_v63 }
 0x13d   :  { %307 = vst.msk [vmem:[#allocation5 + $0x30] sm:$0x1] %vm300_vm12, %v291_v58 }
 0x13e   :  { %308 = vst.msk [vmem:[#allocation5 + $0x38] sm:$0x1] %vm300_vm12, %v292_v62  ;;  %v519_v5 = vadd.f32 %v518_v61, %v492_v4 }
 0x140   :  { %v542_v59 = vadd.f32 %v541_v3, %v519_v5 }
 0x141   :  { %v667_v6 = vpop.f32.mrf.mxu0  ;;  %v724_v54 = vpop.f32.mrf.mxu2 }
 0x142   :  { %v545_v7 = vrot.slane %v542_v59, 1  ;;  %v546_v10 = vrot.slane %v542_v59, 2  ;;  %v547_v13 = vrot.slane %v542_v59, 3  ;;  %559 = vst.msk [vmem:[#allocation5 + $0x1] sm:$0x1] %vm300_vm12, %v542_v59  ;;  %v799_v17 = vpop.f32.mrf.mxu1  ;;  %v548_v20 = vrot.slane %v542_v59, 4 }
 0x143   :  { %v699_v24 = vadd.f32 %v698_v2, %v667_v6  ;;  %v749_v25 = vpop.f32.mrf.mxu3  ;;  %v549_v26 = vrot.slane %v542_v59, 5  ;;  %v550_v27 = vrot.slane %v542_v59, 6  ;;  %v551_v29 = vrot.slane %v542_v59, 7 }
 0x144   :  { %560 = vst.msk [vmem:[#allocation5 + $0x9] sm:$0x1] %vm300_vm12, %v545_v7 }
 0x145   :  { %561 = vst.msk [vmem:[#allocation5 + $0x11] sm:$0x1] %vm300_vm12, %v546_v10  ;;  %v725_v28 = vadd.f32 %v724_v54, %v699_v24 }
 0x146   :  { %562 = vst.msk [vmem:[#allocation5 + $0x19] sm:$0x1] %vm300_vm12, %v547_v13 }
 0x147   :  { %563 = vst.msk [vmem:[#allocation5 + $0x21] sm:$0x1] %vm300_vm12, %v548_v20  ;;  %v750_v30 = vadd.f32 %v749_v25, %v725_v28 }
 0x148   :  { %564 = vst.msk [vmem:[#allocation5 + $0x29] sm:$0x1] %vm300_vm12, %v549_v26 }
 0x149   :  { %565 = vst.msk [vmem:[#allocation5 + $0x31] sm:$0x1] %vm300_vm12, %v550_v27  ;;  %v776_v31 = vpop.f32.mrf.mxu0  ;;  %v925_v32 = vpop.f32.mrf.mxu2 }
 0x14a   :  { %566 = vst.msk [vmem:[#allocation5 + $0x39] sm:$0x1] %vm300_vm12, %v551_v29  ;;  %v777_v33 = vadd.f32 %v776_v31, %v750_v30  ;;  %v1007_v34 = vpop.f32.mrf.mxu1 }
 0x14b   :  { %v956_v35 = vpop.f32.mrf.mxu3 }
 0x14c   :  { %v800_v36 = vadd.f32 %v799_v17, %v777_v33  ;;  %v957_v23 = vadd.f32 %v956_v35, %v925_v32 }
 0x14e   :  { %v803_v37 = vrot.slane %v800_v36, 1  ;;  %v804_v43 = vrot.slane %v800_v36, 2  ;;  %v805_v0 = vrot.slane %v800_v36, 3  ;;  %817 = vst.msk [vmem:[#allocation5 + $0x2] sm:$0x1] %vm300_vm12, %v800_v36  ;;  %v806_v38 = vrot.slane %v800_v36, 4 }
 0x14f   :  { %v807_v39 = vrot.slane %v800_v36, 5  ;;  %v808_v40 = vrot.slane %v800_v36, 6  ;;  %v809_v42 = vrot.slane %v800_v36, 7 }
 0x150   :  { %818 = vst.msk [vmem:[#allocation5 + $0xa] sm:$0x1] %vm300_vm12, %v803_v37 }
 0x151   :  { %819 = vst.msk [vmem:[#allocation5 + $0x12] sm:$0x1] %vm300_vm12, %v804_v43  ;;  %v982_v41 = vpop.f32.mrf.mxu0  ;;  %v1034_v16 = vpop.f32.mrf.mxu2 }
 0x152   :  { %820 = vst.msk [vmem:[#allocation5 + $0x1a] sm:$0x1] %vm300_vm12, %v805_v0  ;;  %v983_v44 = vadd.f32 %v982_v41, %v957_v23  ;;  %v1214_v45 = vpop.f32.mrf.mxu1 }
 0x153   :  { %821 = vst.msk [vmem:[#allocation5 + $0x22] sm:$0x1] %vm300_vm12, %v806_v38  ;;  %v1057_v19 = vpop.f32.mrf.mxu3 }
 0x154   :  { %822 = vst.msk [vmem:[#allocation5 + $0x2a] sm:$0x1] %vm300_vm12, %v807_v39  ;;  %v1008_v21 = vadd.f32 %v1007_v34, %v983_v44 }
 0x155   :  { %823 = vst.msk [vmem:[#allocation5 + $0x32] sm:$0x1] %vm300_vm12, %v808_v40 }
 0x156   :  { %824 = vst.msk [vmem:[#allocation5 + $0x3a] sm:$0x1] %vm300_vm12, %v809_v42  ;;  %v1035_v9 = vadd.f32 %v1034_v16, %v1008_v21 }
 0x158   :  { %v1058_v14 = vadd.f32 %v1057_v19, %v1035_v9 }
 0x159   :  { %v1183_v18 = vpop.f32.mrf.mxu0  ;;  %v1240_v46 = vpop.f32.mrf.mxu2 }
 0x15a   :  { %v1061_v47 = vrot.slane %v1058_v14, 1  ;;  %v1062_v12 = vrot.slane %v1058_v14, 2  ;;  %v1063_v22 = vrot.slane %v1058_v14, 3  ;;  %1075 = vst.msk [vmem:[#allocation5 + $0x3] sm:$0x1] %vm300_vm12, %v1058_v14  ;;  %v1064_v1 = vrot.slane %v1058_v14, 4  ;;  %v1315_v8 = vpop.f32.mrf.mxu1 }
 0x15b   :  { %v1215_v48 = vadd.f32 %v1214_v45, %v1183_v18  ;;  %v1265_v11 = vpop.f32.mrf.mxu3  ;;  %v1065_v49 = vrot.slane %v1058_v14, 5  ;;  %v1066_v15 = vrot.slane %v1058_v14, 6  ;;  %v1067_v51 = vrot.slane %v1058_v14, 7 }
 0x15c   :  { %1076 = vst.msk [vmem:[#allocation5 + $0xb] sm:$0x1] %vm300_vm12, %v1061_v47 }
 0x15d   :  { %1077 = vst.msk [vmem:[#allocation5 + $0x13] sm:$0x1] %vm300_vm12, %v1062_v12  ;;  %v1241_v50 = vadd.f32 %v1240_v46, %v1215_v48 }
 0x15e   :  { %1078 = vst.msk [vmem:[#allocation5 + $0x1b] sm:$0x1] %vm300_vm12, %v1063_v22 }
 0x15f   :  { %1079 = vst.msk [vmem:[#allocation5 + $0x23] sm:$0x1] %vm300_vm12, %v1064_v1  ;;  %v1266_v52 = vadd.f32 %v1265_v11, %v1241_v50 }
 0x160   :  { %1080 = vst.msk [vmem:[#allocation5 + $0x2b] sm:$0x1] %vm300_vm12, %v1065_v49 }
 0x161   :  { %1081 = vst.msk [vmem:[#allocation5 + $0x33] sm:$0x1] %vm300_vm12, %v1066_v15  ;;  %v1292_v53 = vpop.f32.mrf.mxu0  ;;  %v1441_v55 = vpop.f32.mrf.mxu2 }
 0x162   :  { %1082 = vst.msk [vmem:[#allocation5 + $0x3b] sm:$0x1] %vm300_vm12, %v1067_v51  ;;  %v1293_v56 = vadd.f32 %v1292_v53, %v1266_v52  ;;  %v1523_v60 = vpop.f32.mrf.mxu1 }
 0x163   :  { %v1472_v57 = vpop.f32.mrf.mxu3 }
 0x164   :  { %v1316_v58 = vadd.f32 %v1315_v8, %v1293_v56  ;;  %v1473_v4 = vadd.f32 %v1472_v57, %v1441_v55 }
 0x166   :  { %v1319_v61 = vrot.slane %v1316_v58, 1  ;;  %v1320_v62 = vrot.slane %v1316_v58, 2  ;;  %v1321_v63 = vrot.slane %v1316_v58, 3  ;;  %1333 = vst.msk [vmem:[#allocation5 + $0x4] sm:$0x1] %vm300_vm12, %v1316_v58  ;;  %v1322_v2 = vrot.slane %v1316_v58, 4 }
 0x167   :  { %v1323_v3 = vrot.slane %v1316_v58, 5  ;;  %v1324_v5 = vrot.slane %v1316_v58, 6  ;;  %v1325_v54 = vrot.slane %v1316_v58, 7 }
 0x168   :  { %1334 = vst.msk [vmem:[#allocation5 + $0xc] sm:$0x1] %vm300_vm12, %v1319_v61 }
 0x169   :  { %1335 = vst.msk [vmem:[#allocation5 + $0x14] sm:$0x1] %vm300_vm12, %v1320_v62  ;;  %v1498_v59 = vpop.f32.mrf.mxu0  ;;  %v1550_v6 = vpop.f32.mrf.mxu2 }
 0x16a   :  { %1336 = vst.msk [vmem:[#allocation5 + $0x1c] sm:$0x1] %vm300_vm12, %v1321_v63  ;;  %v1499_v7 = vadd.f32 %v1498_v59, %v1473_v4  ;;  %v1730_v20 = vpop.f32.mrf.mxu1 }
 0x16b   :  { %1337 = vst.msk [vmem:[#allocation5 + $0x24] sm:$0x1] %vm300_vm12, %v1322_v2  ;;  %v1573_v10 = vpop.f32.mrf.mxu3 }
 0x16c   :  { %1338 = vst.msk [vmem:[#allocation5 + $0x2c] sm:$0x1] %vm300_vm12, %v1323_v3  ;;  %v1524_v13 = vadd.f32 %v1523_v60, %v1499_v7 }
 0x16d   :  { %1339 = vst.msk [vmem:[#allocation5 + $0x34] sm:$0x1] %vm300_vm12, %v1324_v5 }
 0x16e   :  { %1340 = vst.msk [vmem:[#allocation5 + $0x3c] sm:$0x1] %vm300_vm12, %v1325_v54  ;;  %v1551_v17 = vadd.f32 %v1550_v6, %v1524_v13 }
 0x170   :  { %v1574_v24 = vadd.f32 %v1573_v10, %v1551_v17 }
 0x171   :  { %v1699_v25 = vpop.f32.mrf.mxu0  ;;  %v1756_v26 = vpop.f32.mrf.mxu2 }
 0x172   :  { %v1577_v27 = vrot.slane %v1574_v24, 1  ;;  %v1578_v28 = vrot.slane %v1574_v24, 2  ;;  %v1579_v29 = vrot.slane %v1574_v24, 3  ;;  %1591 = vst.msk [vmem:[#allocation5 + $0x5] sm:$0x1] %vm300_vm12, %v1574_v24  ;;  %v1580_v30 = vrot.slane %v1574_v24, 4  ;;  %v1831_v43 = vpop.f32.mrf.mxu1 }
 0x173   :  { %v1731_v31 = vadd.f32 %v1730_v20, %v1699_v25  ;;  %v1781_v32 = vpop.f32.mrf.mxu3  ;;  %v1581_v33 = vrot.slane %v1574_v24, 5  ;;  %v1582_v34 = vrot.slane %v1574_v24, 6  ;;  %v1583_v36 = vrot.slane %v1574_v24, 7 }
 0x174   :  { %1592 = vst.msk [vmem:[#allocation5 + $0xd] sm:$0x1] %vm300_vm12, %v1577_v27 }
 0x175   :  { %1593 = vst.msk [vmem:[#allocation5 + $0x15] sm:$0x1] %vm300_vm12, %v1578_v28  ;;  %v1757_v35 = vadd.f32 %v1756_v26, %v1731_v31 }
 0x176   :  { %1594 = vst.msk [vmem:[#allocation5 + $0x1d] sm:$0x1] %vm300_vm12, %v1579_v29 }
 0x177   :  { %1595 = vst.msk [vmem:[#allocation5 + $0x25] sm:$0x1] %vm300_vm12, %v1580_v30  ;;  %v1782_v37 = vadd.f32 %v1781_v32, %v1757_v35 }
 0x178   :  { %1596 = vst.msk [vmem:[#allocation5 + $0x2d] sm:$0x1] %vm300_vm12, %v1581_v33 }
 0x179   :  { %1597 = vst.msk [vmem:[#allocation5 + $0x35] sm:$0x1] %vm300_vm12, %v1582_v34  ;;  %v1808_v0 = vpop.f32.mrf.mxu0  ;;  %v1949_v39 = vpop.f32.mrf.mxu2 }
 0x17a   :  { %1598 = vst.msk [vmem:[#allocation5 + $0x3d] sm:$0x1] %vm300_vm12, %v1583_v36  ;;  %v1809_v38 = vadd.f32 %v1808_v0, %v1782_v37  ;;  %v2031_v46 = vpop.f32.mrf.mxu1 }
 0x17b   :  { %v1980_v40 = vpop.f32.mrf.mxu3 }
 0x17c   :  { %v1832_v23 = vadd.f32 %v1831_v43, %v1809_v38  ;;  %v1981_v19 = vadd.f32 %v1980_v40, %v1949_v39 }
 0x17e   :  { %v1835_v41 = vrot.slane %v1832_v23, 1  ;;  %v1836_v16 = vrot.slane %v1832_v23, 2  ;;  %v1837_v42 = vrot.slane %v1832_v23, 3  ;;  %1849 = vst.msk [vmem:[#allocation5 + $0x6] sm:$0x1] %vm300_vm12, %v1832_v23  ;;  %v1838_v44 = vrot.slane %v1832_v23, 4 }
 0x17f   :  { %v1839_v45 = vrot.slane %v1832_v23, 5  ;;  %v1840_v21 = vrot.slane %v1832_v23, 6  ;;  %v1841_v14 = vrot.slane %v1832_v23, 7 }
 0x180   :  { %1850 = vst.msk [vmem:[#allocation5 + $0xe] sm:$0x1] %vm300_vm12, %v1835_v41 }
 0x181   :  { %1851 = vst.msk [vmem:[#allocation5 + $0x16] sm:$0x1] %vm300_vm12, %v1836_v16  ;;  %v2006_v9 = vpop.f32.mrf.mxu0  ;;  %v2058_v12 = vpop.f32.mrf.mxu2 }
 0x182   :  { %1852 = vst.msk [vmem:[#allocation5 + $0x1e] sm:$0x1] %vm300_vm12, %v1837_v42  ;;  %v2007_v18 = vadd.f32 %v2006_v9, %v1981_v19 }
 0x183   :  { %1853 = vst.msk [vmem:[#allocation5 + $0x26] sm:$0x1] %vm300_vm12, %v1838_v44  ;;  %v2081_v1 = vpop.f32.mrf.mxu3 }
 0x184   :  { %1854 = vst.msk [vmem:[#allocation5 + $0x2e] sm:$0x1] %vm300_vm12, %v1839_v45  ;;  %v2032_v47 = vadd.f32 %v2031_v46, %v2007_v18 }
 0x185   :  { %1855 = vst.msk [vmem:[#allocation5 + $0x36] sm:$0x1] %vm300_vm12, %v1840_v21 }
 0x186   :  { %1856 = vst.msk [vmem:[#allocation5 + $0x3e] sm:$0x1] %vm300_vm12, %v1841_v14  ;;  %v2059_v22 = vadd.f32 %v2058_v12, %v2032_v47 }
 0x188   :  { %v2082_v48 = vadd.f32 %v2081_v1, %v2059_v22 }
 0x18a   :  { %v2085_v8 = vrot.slane %v2082_v48, 1  ;;  %v2086_v11 = vrot.slane %v2082_v48, 2  ;;  %v2087_v49 = vrot.slane %v2082_v48, 3  ;;  %2099 = vst.msk [vmem:[#allocation5 + $0x7] sm:$0x1] %vm300_vm12, %v2082_v48  ;;  %v2088_v15 = vrot.slane %v2082_v48, 4 }
 0x18b   :  { %v2089_v50 = vrot.slane %v2082_v48, 5  ;;  %v2090_v51 = vrot.slane %v2082_v48, 6  ;;  %v2091_v52 = vrot.slane %v2082_v48, 7 }
 0x18c   :  { %2100 = vst.msk [vmem:[#allocation5 + $0xf] sm:$0x1] %vm300_vm12, %v2085_v8 }
 0x18d   :  { %2101 = vst.msk [vmem:[#allocation5 + $0x17] sm:$0x1] %vm300_vm12, %v2086_v11 }
 0x18e   :  { %2102 = vst.msk [vmem:[#allocation5 + $0x1f] sm:$0x1] %vm300_vm12, %v2087_v49 }
 0x18f   :  { %2103 = vst.msk [vmem:[#allocation5 + $0x27] sm:$0x1] %vm300_vm12, %v2088_v15 }
 0x190   :  { %2104 = vst.msk [vmem:[#allocation5 + $0x2f] sm:$0x1] %vm300_vm12, %v2089_v50 }
 0x191   :  { %2105 = vst.msk [vmem:[#allocation5 + $0x37] sm:$0x1] %vm300_vm12, %v2090_v51 }
 0x192   :  { %2106 = vst.msk [vmem:[#allocation5 + $0x3f] sm:$0x1] %vm300_vm12, %v2091_v52 }
 0x193   :  { %2119 = dma.vmem_to_hbm [thread:$0]  %s2112_s15, 1024, %s2114_s18, [#allocation4], %s2237_s11, %s2237_s11, %s2238_s12  }
 0x194   :  { %2234 = dma.done.wait [#allocation4], 1024  }
 0x195   :  { %2235 = vsyncadd [#allocation4], 4294966272 }
 0x196   :  { %2124 = vsyncpa [#allocation3], 1 }
 0x197   :  { %2125 = vsyncpa [#allocation4], 1 }

</bundles_post_ra>
